<compile_context>
chip_gen: v7x
topology: tpu7x:2x2x1
jax: 0.10.0
libtpu: 0.0.40
codegen_flags: <defaults>
</compile_context>

<pallas_src>
import functools
import math

import jax
import jax.numpy as jnp
from jax.experimental import pallas as pl
from jax.experimental.pallas import tpu as pltpu

_VMEM_LIMIT = 48 * 1024 * 1024  # safe on v5e/v6e (128 MiB) and v7x (64 MiB)


def _pick_tile(dim, cap, step=128):
    """Largest multiple of `step` <= cap that divides dim; full dim if small."""
    if dim <= cap:
        return dim
    cap = (cap // step) * step
    for t in range(cap, step - 1, -step):
        if dim % t == 0:
            return t
    # TODO(synk): ragged-edge (non-step-divisible) dims fall back to a full-dim
    # block; real vocab sizes are normally padded to a multiple of 128.
    return dim


# ----------------------------------------------------------------------------
# Tiled matmul: o = act(x @ w + b) [+ residual], fp32 accumulation
# ----------------------------------------------------------------------------
def _matmul_kernel(x_ref, w_ref, b_ref, *rest, activation, has_residual):
    if has_residual:
        r_ref, o_ref, acc_ref = rest
    else:
        r_ref = None
        o_ref, acc_ref = rest
    k = pl.program_id(2)

    @pl.when(k == 0)
    def _():
        acc_ref[...] = jnp.zeros_like(acc_ref)

    acc_ref[...] += jnp.dot(x_ref[...], w_ref[...],
                            preferred_element_type=jnp.float32)

    @pl.when(k == pl.num_programs(2) - 1)
    def _():
        y = acc_ref[...] + b_ref[...].astype(jnp.float32)
        if activation == "gelu":
            # tanh-approx GELU (matches the reference BERT implementation);
            # epilogue stays in fp32 (v5e has no bf16 VPU/EUP path).
            y = 0.5 * y * (1.0 + jnp.tanh(
                0.7978845608028654 * (y + 0.044715 * y * y * y)))
        if r_ref is not None:
            y = y + r_ref[...].astype(jnp.float32)
        o_ref[...] = y.astype(o_ref.dtype)


def pallas_matmul(x, w, b, residual=None, activation=None, out_dtype=None,
                  tm_cap=256, tn_cap=256, tk_cap=512):
    M, K = x.shape
    K2, N = w.shape
    assert K == K2
    out_dtype = out_dtype or x.dtype
    tm = _pick_tile(M, tm_cap)
    tn = _pick_tile(N, tn_cap)
    tk = _pick_tile(K, tk_cap)
    grid = (M // tm, N // tn, K // tk)

    in_specs = [
        pl.BlockSpec((tm, tk), lambda i, j, k: (i, k)),
        pl.BlockSpec((tk, tn), lambda i, j, k: (k, j)),
        pl.BlockSpec((1, tn), lambda i, j, k: (0, j)),
    ]
    args = [x, w, b.reshape(1, N).astype(jnp.float32)]
    if residual is not None:
        in_specs.append(pl.BlockSpec((tm, tn), lambda i, j, k: (i, j)))
        args.append(residual)

    bytes_accessed = (x.size * x.dtype.itemsize + w.size * w.dtype.itemsize
                      + M * N * jnp.dtype(out_dtype).itemsize)
    if residual is not None:
        bytes_accessed += residual.size * residual.dtype.itemsize

    return pl.pallas_call(
        functools.partial(_matmul_kernel, activation=activation,
                          has_residual=residual is not None),
        out_shape=jax.ShapeDtypeStruct((M, N), out_dtype),
        grid=grid,
        in_specs=in_specs,
        out_specs=pl.BlockSpec((tm, tn), lambda i, j, k: (i, j)),
        scratch_shapes=[pltpu.VMEM((tm, tn), jnp.float32)],
        compiler_params=pltpu.CompilerParams(
            dimension_semantics=("parallel", "parallel", "arbitrary"),
            vmem_limit_bytes=_VMEM_LIMIT),
        cost_estimate=pl.CostEstimate(
            flops=2 * M * N * K,
            transcendentals=M * N if activation == "gelu" else 0,
            bytes_accessed=bytes_accessed),
    )(*args)


# ----------------------------------------------------------------------------
# Fused matmul + bias + residual-add + LayerNorm.
# Emits BOTH the updated residual stream (x @ w + b + residual) and its
# LayerNorm, removing the standalone LN kernel's extra HBM round trip.
# Output hidden dim N is kept as a single lane-dense tile (N == hidden).
# ----------------------------------------------------------------------------
def _matmul_res_ln_kernel(x_ref, w_ref, b_ref, r_ref, g_ref, bb_ref,
                          o_res_ref, o_norm_ref, acc_ref, *, eps):
    k = pl.program_id(1)

    @pl.when(k == 0)
    def _():
        acc_ref[...] = jnp.zeros_like(acc_ref)

    acc_ref[...] += jnp.dot(x_ref[...], w_ref[...],
                            preferred_element_type=jnp.float32)

    @pl.when(k == pl.num_programs(1) - 1)
    def _():
        y = (acc_ref[...] + b_ref[...].astype(jnp.float32)
             + r_ref[...].astype(jnp.float32))
        o_res_ref[...] = y.astype(o_res_ref.dtype)
        mu = jnp.mean(y, axis=-1, keepdims=True)
        var = jnp.mean(jnp.square(y - mu), axis=-1, keepdims=True)
        z = (y - mu) * jax.lax.rsqrt(var + eps)
        z = z * g_ref[...].astype(jnp.float32) + bb_ref[...].astype(jnp.float32)
        o_norm_ref[...] = z.astype(o_norm_ref.dtype)


def pallas_matmul_res_ln(x, w, b, residual, gamma, beta, eps=1e-6,
                         out_dtype=None, tm_cap=256, tk_cap=512):
    # eps=1e-6 matches the codertimo LayerNorm reference (not nn.LayerNorm 1e-12).
    M, K = x.shape
    K2, N = w.shape
    assert K == K2
    out_dtype = out_dtype or x.dtype
    tm = _pick_tile(M, tm_cap)
    tk = _pick_tile(K, tk_cap)
    grid = (M // tm, K // tk)

    bytes_accessed = (x.size * x.dtype.itemsize + w.size * w.dtype.itemsize
                      + residual.size * residual.dtype.itemsize
                      + 2 * M * N * jnp.dtype(out_dtype).itemsize)

    return pl.pallas_call(
        functools.partial(_matmul_res_ln_kernel, eps=eps),
        out_shape=(jax.ShapeDtypeStruct((M, N), out_dtype),
                   jax.ShapeDtypeStruct((M, N), out_dtype)),
        grid=grid,
        in_specs=[
            pl.BlockSpec((tm, tk), lambda i, k: (i, k)),
            pl.BlockSpec((tk, N), lambda i, k: (k, 0)),
            pl.BlockSpec((1, N), lambda i, k: (0, 0)),
            pl.BlockSpec((tm, N), lambda i, k: (i, 0)),
            pl.BlockSpec((1, N), lambda i, k: (0, 0)),
            pl.BlockSpec((1, N), lambda i, k: (0, 0)),
        ],
        out_specs=(pl.BlockSpec((tm, N), lambda i, k: (i, 0)),
                   pl.BlockSpec((tm, N), lambda i, k: (i, 0))),
        scratch_shapes=[pltpu.VMEM((tm, N), jnp.float32)],
        compiler_params=pltpu.CompilerParams(
            dimension_semantics=("parallel", "arbitrary"),
            vmem_limit_bytes=_VMEM_LIMIT),
        cost_estimate=pl.CostEstimate(
            flops=2 * M * N * K,
            transcendentals=M,           # rsqrt per row
            bytes_accessed=bytes_accessed),
    )(x, w, b.reshape(1, N).astype(jnp.float32), residual,
      gamma.reshape(1, N).astype(jnp.float32),
      beta.reshape(1, N).astype(jnp.float32))


# ----------------------------------------------------------------------------
# Row-tiled LayerNorm (fp32 statistics, bf16 in/out) -- used once, on the
# embedding output; all other LayerNorms are fused into matmul epilogues.
# ----------------------------------------------------------------------------
def _layernorm_kernel(x_ref, g_ref, b_ref, o_ref, *, eps):
    x = x_ref[...].astype(jnp.float32)
    mu = jnp.mean(x, axis=-1, keepdims=True)
    var = jnp.mean(jnp.square(x - mu), axis=-1, keepdims=True)
    y = (x - mu) * jax.lax.rsqrt(var + eps)
    y = y * g_ref[...].astype(jnp.float32) + b_ref[...].astype(jnp.float32)
    o_ref[...] = y.astype(o_ref.dtype)


def pallas_layernorm(x2d, gamma, beta, eps=1e-6):
    M, H = x2d.shape
    tm = _pick_tile(M, 1024, step=8)
    return pl.pallas_call(
        functools.partial(_layernorm_kernel, eps=eps),
        out_shape=jax.ShapeDtypeStruct((M, H), x2d.dtype),
        grid=(M // tm,),
        in_specs=[
            pl.BlockSpec((tm, H), lambda i: (i, 0)),
            pl.BlockSpec((1, H), lambda i: (0, 0)),
            pl.BlockSpec((1, H), lambda i: (0, 0)),
        ],
        out_specs=pl.BlockSpec((tm, H), lambda i: (i, 0)),
        compiler_params=pltpu.CompilerParams(
            dimension_semantics=("parallel",),
            vmem_limit_bytes=_VMEM_LIMIT),
    )(x2d, gamma.reshape(1, H), beta.reshape(1, H))


# ----------------------------------------------------------------------------
# Attention: one batch per grid step, all heads, key-padding mask broadcast
# in-kernel.  Q/K/V arrive fused as one [B, S, 3H] tensor (static lane slices).
# ----------------------------------------------------------------------------
def _attention_kernel(qkv_ref, kpm_ref, o_ref, *, n_heads, scale):
    kpm = kpm_ref[0]                       # [1, S] float32, 1.0 = attend
    H = qkv_ref.shape[2] // 3
    Dh = H // n_heads
    for h in range(n_heads):
        q = qkv_ref[0, :, h * Dh:(h + 1) * Dh]              # [S, Dh] bf16
        k = qkv_ref[0, :, H + h * Dh:H + (h + 1) * Dh]      # [S, Dh] bf16
        v = qkv_ref[0, :, 2 * H + h * Dh:2 * H + (h + 1) * Dh]
        s = jnp.dot(q, k.T, preferred_element_type=jnp.float32) * scale
        s = jnp.where(kpm > 0.0, s, jnp.float32(-1e9))      # broadcast over rows
        s = s - jnp.max(s, axis=-1, keepdims=True)
        p = jnp.exp(s)
        p = p * pl.reciprocal(jnp.sum(p, axis=-1, keepdims=True), approx=True)
        ctx = jnp.dot(p.astype(v.dtype), v, preferred_element_type=jnp.float32)
        o_ref[0, :, h * Dh:(h + 1) * Dh] = ctx.astype(o_ref.dtype)


def pallas_attention(qkv, kpm, n_heads):
    # TODO(synk): for very long sequences (S >= 2k) switch to a flash-style
    # query/key-tiled online softmax; full S x S scores per head fit VMEM here.
    B, S, H3 = qkv.shape
    H = H3 // 3
    scale = 1.0 / math.sqrt(H // n_heads)
    return pl.pallas_call(
        functools.partial(_attention_kernel, n_heads=n_heads, scale=scale),
        out_shape=jax.ShapeDtypeStruct((B, S, H), qkv.dtype),
        grid=(B,),
        in_specs=[
            pl.BlockSpec((1, S, H3), lambda b: (b, 0, 0)),
            pl.BlockSpec((1, 1, S), lambda b: (b, 0, 0)),
        ],
        out_specs=pl.BlockSpec((1, S, H), lambda b: (b, 0, 0)),
        compiler_params=pltpu.CompilerParams(
            dimension_semantics=("parallel",),
            vmem_limit_bytes=_VMEM_LIMIT),
    )(qkv, kpm)


# ----------------------------------------------------------------------------
# Row-tiled log-softmax (fp32), row block sized to bound VMEM at large vocab
# ----------------------------------------------------------------------------
def _log_softmax_kernel(x_ref, o_ref):
    x = x_ref[...].astype(jnp.float32)
    z = x - jnp.max(x, axis=-1, keepdims=True)
    lse = jnp.log(jnp.sum(jnp.exp(z), axis=-1, keepdims=True))
    o_ref[...] = (z - lse).astype(o_ref.dtype)


def pallas_log_softmax(x2d):
    # TODO(synk): a flash-style fusion of the MLM matmul + log-softmax would
    # save one HBM round trip of the [M, V] logits; kept two-pass for clarity.
    M, N = x2d.shape
    budget_rows = max(8, (4 * 1024 * 1024) // (4 * N))   # ~4 MiB per buffer
    tm = _pick_tile(M, min(512, budget_rows), step=8)
    return pl.pallas_call(
        _log_softmax_kernel,
        out_shape=jax.ShapeDtypeStruct((M, N), jnp.float32),
        grid=(M // tm,),
        in_specs=[pl.BlockSpec((tm, N), lambda i: (i, 0))],
        out_specs=pl.BlockSpec((tm, N), lambda i: (i, 0)),
        compiler_params=pltpu.CompilerParams(
            dimension_semantics=("parallel",),
            vmem_limit_bytes=_VMEM_LIMIT),
    )(x2d)


# ----------------------------------------------------------------------------
# Parameter init (deterministic, synthetic) -- QKV weights stored fused [H, 3H]
# ----------------------------------------------------------------------------
def init_params(key, vocab_size, hidden, n_layers, ff, dtype=jnp.bfloat16):
    keys = iter(jax.random.split(key, 8 + 8 * n_layers))

    def nrm(shape):
        return (0.02 * jax.random.normal(next(keys), shape, jnp.float32)
                ).astype(dtype)

    p = {
        "tok_emb": (0.02 * jax.random.normal(next(keys), (vocab_size, hidden),
                                             jnp.float32)).at[0].set(0.0),
        "seg_emb": (0.02 * jax.random.normal(next(keys), (3, hidden),
                                             jnp.float32)).at[0].set(0.0),
        "nsp_w": 0.02 * jax.random.normal(next(keys), (hidden, 2), jnp.float32),
        "nsp_b": jnp.zeros((2,), jnp.float32),
        "mlm_w": nrm((hidden, vocab_size)),
        "mlm_b": jnp.zeros((vocab_size,), jnp.float32),
        "layers": [],
    }
    for _ in range(n_layers):
        p["layers"].append({
            "w_qkv": nrm((hidden, 3 * hidden)),
            "b_qkv": jnp.zeros((3 * hidden,), jnp.float32),
            "wo": nrm((hidden, hidden)), "bo": jnp.zeros((hidden,), jnp.float32),
            "ln1_g": jnp.ones((hidden,), jnp.float32),
            "ln1_b": jnp.zeros((hidden,), jnp.float32),
            "w1": nrm((hidden, ff)), "b1": jnp.zeros((ff,), jnp.float32),
            "w2": nrm((ff, hidden)), "b2": jnp.zeros((hidden,), jnp.float32),
            "ln2_g": jnp.ones((hidden,), jnp.float32),
            "ln2_b": jnp.zeros((hidden,), jnp.float32),
        })
    return p


def sinusoidal_pe(S, H):
    pos = jnp.arange(S, dtype=jnp.float32)[:, None]
    i = jnp.arange(0, H, 2, dtype=jnp.float32)
    div = jnp.exp(-jnp.log(10000.0) * i / H)
    ang = pos * div
    pe = jnp.zeros((S, H), jnp.float32)
    pe = pe.at[:, 0::2].set(jnp.sin(ang))
    pe = pe.at[:, 1::2].set(jnp.cos(ang))
    return pe


# ----------------------------------------------------------------------------
# Forward pass (embedding gathers are XLA glue; all hot paths in Pallas)
# ----------------------------------------------------------------------------
def bert_forward(params, x_ids, seg_ids, n_heads):
    B, S = x_ids.shape
    H = params["tok_emb"].shape[1]

    # tok + seg + sinusoidal positional embeddings; dropout omitted (eval mode)
    h = (params["tok_emb"][x_ids] + params["seg_emb"][seg_ids]
         + sinusoidal_pe(S, H)[None]).astype(jnp.bfloat16)

    # key-padding mask [B, 1, S]; broadcast to [S, S] inside the kernel
    kpm = (x_ids > 0).astype(jnp.float32)[:, None, :]

    layers = params["layers"]
    n_layers = len(layers)

    h2 = h.reshape(B * S, H)                                  # bf16 residual stream
    # LayerNorm for the very first pre-norm sublayer; all subsequent LNs are
    # fused into the preceding matmul's epilogue.
    hn = pallas_layernorm(h2, layers[0]["ln1_g"], layers[0]["ln1_b"])

    for li, lp in enumerate(layers):
        # --- self-attention sublayer (pre-norm residual) ---
        qkv = pallas_matmul(hn, lp["w_qkv"], lp["b_qkv"])     # [B*S, 3H]
        ctx = pallas_attention(qkv.reshape(B, S, 3 * H), kpm, n_heads)
        # wo matmul + residual add + LN2 (feeds the FFN) fused in one kernel
        h2, hn = pallas_matmul_res_ln(ctx.reshape(B * S, H), lp["wo"], lp["bo"],
                                      residual=h2,
                                      gamma=lp["ln2_g"], beta=lp["ln2_b"])

        # --- feed-forward sublayer (pre-norm residual, GELU) ---
        f = pallas_matmul(hn, lp["w1"], lp["b1"], activation="gelu")
        if li + 1 < n_layers:
            nxt = layers[li + 1]
            # w2 matmul + residual add + next layer's LN1, fused
            h2, hn = pallas_matmul_res_ln(f, lp["w2"], lp["b2"], residual=h2,
                                          gamma=nxt["ln1_g"], beta=nxt["ln1_b"])
        else:
            # no final LayerNorm in the reference model
            h2 = pallas_matmul(f, lp["w2"], lp["b2"], residual=h2)
    return h2.reshape(B, S, H)


def bertlm_forward(params, x_ids, seg_ids, n_heads):
    h = bert_forward(params, x_ids, seg_ids, n_heads)         # [B, S, H] bf16
    B, S, H = h.shape

    # NSP head: log_softmax(Linear(H, 2)(x[:, 0])) -- N=2 is far below one lane
    # width, so a Pallas kernel is pure launch/layout overhead; plain JAX.
    cls = h[:, 0, :].astype(jnp.float32)
    nsp_logits = cls @ params["nsp_w"] + params["nsp_b"]
    nsp = jax.nn.log_softmax(nsp_logits, axis=-1)

    # MLM head: tiled matmul -> fp32 logits -> row-tiled log-softmax.
    logits = pallas_matmul(h.reshape(B * S, H), params["mlm_w"],
                           params["mlm_b"], out_dtype=jnp.float32)
    mlm = pallas_log_softmax(logits).reshape(B, S, -1)
    return nsp, mlm


if __name__ == "__main__":
    B, S, H, N_HEADS, N_LAYERS, FF, VOCAB = 2, 8, 32, 2, 2, 128, 64

    key = jax.random.PRNGKey(0)
    kp, kx, ks = jax.random.split(key, 3)
    params = init_params(kp, VOCAB, H, N_LAYERS, FF)

    x_ids = jax.random.randint(kx, (B, S), 1, VOCAB)     # token ids (>0: no pad)
    seg_ids = jax.random.randint(ks, (B, S), 1, 3)       # segment labels {1, 2}

    fwd = jax.jit(functools.partial(bertlm_forward, n_heads=N_HEADS))
    nsp, mlm = fwd(params, x_ids, seg_ids)
    nsp, mlm = jax.block_until_ready((nsp, mlm))

    assert nsp.shape == (B, 2)
    assert mlm.shape == (B, S, VOCAB)
    # log-softmax rows must normalise to 1 in prob space
    assert jnp.allclose(jnp.exp(nsp).sum(-1), 1.0, atol=1e-4)
    assert jnp.allclose(jnp.exp(mlm).sum(-1), 1.0, atol=1e-4)
    print("KERNEL_OK")
</pallas_src>

<mosaic_0001>
module attributes {stable_mosaic.version = 11 : i64} {
  func.func @_matmul_kernel(%arg0: i32, %arg1: i32, %arg2: i32, %arg3: memref<16x32xbf16, #tpu.memory_space<vmem>>, %arg4: memref<32x96xbf16, #tpu.memory_space<vmem>>, %arg5: memref<1x96xf32, #tpu.memory_space<vmem>>, %arg6: memref<16x96xbf16, #tpu.memory_space<vmem>>, %arg7: memref<16x96xf32, #tpu.memory_space<vmem>>) attributes {dimension_semantics = [#tpu.dimension_semantics<parallel>, #tpu.dimension_semantics<parallel>, #tpu.dimension_semantics<arbitrary>], iteration_bounds = array<i64: 1, 1, 1>, scalar_prefetch = 0 : i64, scratch_operands = 1 : i64, tpu.core_type = #tpu.core_type<tc>, window_params = [{transform_indices = @transform_0, window_bounds = array<i64: 16, 32>}, {transform_indices = @transform_1, window_bounds = array<i64: 32, 96>}, {transform_indices = @transform_2, window_bounds = array<i64: 1, 96>}, {transform_indices = @transform_3, window_bounds = array<i64: 16, 96>}]} {
    %c0_i32 = arith.constant 0 : i32
    %0 = arith.cmpi eq, %arg2, %c0_i32 : i32
    %1 = arith.extui %0 : i1 to i32
    %c0_i32_0 = arith.constant 0 : i32
    %2 = arith.cmpi ne, %1, %c0_i32_0 : i32
    scf.if %2 {
      %cst_10 = arith.constant 0.000000e+00 : f32
      %12 = vector.broadcast %cst_10 : f32 to vector<16x96xf32>
      %c0_11 = arith.constant 0 : index
      %c0_12 = arith.constant 0 : index
      %13 = vector.load %arg7[%c0_11, %c0_12] : memref<16x96xf32, #tpu.memory_space<vmem>>, vector<16x96xf32>
      tpu.vector_store %arg7[%c0_11, %c0_12], %12 {strides = array<i32>} : memref<16x96xf32, #tpu.memory_space<vmem>>, vector<16x96xf32>,
    } else {
    }
    %c0 = arith.constant 0 : index
    %c0_1 = arith.constant 0 : index
    %3 = vector.load %arg7[%c0, %c0_1] : memref<16x96xf32, #tpu.memory_space<vmem>>, vector<16x96xf32>
    %c0_2 = arith.constant 0 : index
    %c0_3 = arith.constant 0 : index
    %4 = vector.load %arg3[%c0_2, %c0_3] : memref<16x32xbf16, #tpu.memory_space<vmem>>, vector<16x32xbf16>
    %c0_4 = arith.constant 0 : index
    %c0_5 = arith.constant 0 : index
    %5 = vector.load %arg4[%c0_4, %c0_5] : memref<32x96xbf16, #tpu.memory_space<vmem>>, vector<32x96xbf16>
    %cst = arith.constant dense<0.000000e+00> : vector<16x96xf32>
    %6 = tpu.matmul %4, %5, %cst {dimension_numbers = #tpu.dot_dimension_numbers<[1], [0], [0], [1], [0, 0, 1, 1], [], []>} : vector<16x32xbf16>, vector<32x96xbf16>, vector<16x96xf32> -> vector<16x96xf32>
    %7 = arith.addf %3, %6 : vector<16x96xf32>
    %c0_6 = arith.constant 0 : index
    %c0_7 = arith.constant 0 : index
    %8 = vector.load %arg7[%c0_6, %c0_7] : memref<16x96xf32, #tpu.memory_space<vmem>>, vector<16x96xf32>
    tpu.vector_store %arg7[%c0_6, %c0_7], %7 {strides = array<i32>} : memref<16x96xf32, #tpu.memory_space<vmem>>, vector<16x96xf32>,
    %c0_i32_8 = arith.constant 0 : i32
    %9 = arith.cmpi eq, %arg2, %c0_i32_8 : i32
    %10 = arith.extui %9 : i1 to i32
    %c0_i32_9 = arith.constant 0 : i32
    %11 = arith.cmpi ne, %10, %c0_i32_9 : i32
    scf.if %11 {
      %c0_10 = arith.constant 0 : index
      %c0_11 = arith.constant 0 : index
      %12 = vector.load %arg7[%c0_10, %c0_11] : memref<16x96xf32, #tpu.memory_space<vmem>>, vector<16x96xf32>
      %c0_12 = arith.constant 0 : index
      %c0_13 = arith.constant 0 : index
      %13 = vector.load %arg5[%c0_12, %c0_13] : memref<1x96xf32, #tpu.memory_space<vmem>>, vector<1x96xf32>
      %14 = vector.broadcast %13 : vector<1x96xf32> to vector<16x96xf32>
      %15 = arith.addf %12, %14 : vector<16x96xf32>
      %16 = arith.truncf %15 : vector<16x96xf32> to vector<16x96xbf16>
      %c0_14 = arith.constant 0 : index
      %c0_15 = arith.constant 0 : index
      %17 = vector.load %arg6[%c0_14, %c0_15] : memref<16x96xbf16, #tpu.memory_space<vmem>>, vector<16x96xbf16>
      tpu.vector_store %arg6[%c0_14, %c0_15], %16 {strides = array<i32>} : memref<16x96xbf16, #tpu.memory_space<vmem>>, vector<16x96xbf16>,
    } else {
    }
    return
  }
  func.func @transform_0(%arg0: i32, %arg1: i32, %arg2: i32) -> (i32, i32) {
    %c0_i32 = arith.constant 0 : i32
    return %arg0, %arg2 : i32, i32
  }
  func.func @transform_1(%arg0: i32, %arg1: i32, %arg2: i32) -> (i32, i32) {
    %c0_i32 = arith.constant 0 : i32
    return %arg2, %arg1 : i32, i32
  }
  func.func @transform_2(%arg0: i32, %arg1: i32, %arg2: i32) -> (i32, i32) {
    %c0_i32 = arith.constant 0 : i32
    %c0_i32_0 = arith.constant 0 : i32
    return %c0_i32, %arg1 : i32, i32
  }
  func.func @transform_3(%arg0: i32, %arg1: i32, %arg2: i32) -> (i32, i32) {
    %c0_i32 = arith.constant 0 : i32
    return %arg0, %arg1 : i32, i32
  }
}

module attributes {stable_mosaic.version = 11 : i64} {
  func.func @_layernorm_kernel(%arg0: i32, %arg1: memref<16x32xbf16, #tpu.memory_space<vmem>>, %arg2: memref<1x32xf32, #tpu.memory_space<vmem>>, %arg3: memref<1x32xf32, #tpu.memory_space<vmem>>, %arg4: memref<16x32xbf16, #tpu.memory_space<vmem>>) attributes {dimension_semantics = [#tpu.dimension_semantics<parallel>], iteration_bounds = array<i64: 1>, scalar_prefetch = 0 : i64, scratch_operands = 0 : i64, tpu.core_type = #tpu.core_type<tc>, window_params = [{transform_indices = @transform_0, window_bounds = array<i64: 16, 32>}, {pipeline_mode = #tpu.pipeline_mode<synchronous>, transform_indices = @transform_1, window_bounds = array<i64: 1, 32>}, {pipeline_mode = #tpu.pipeline_mode<synchronous>, transform_indices = @transform_2, window_bounds = array<i64: 1, 32>}, {transform_indices = @transform_3, window_bounds = array<i64: 16, 32>}]} {
    %c0 = arith.constant 0 : index
    %c0_0 = arith.constant 0 : index
    %0 = vector.load %arg1[%c0, %c0_0] : memref<16x32xbf16, #tpu.memory_space<vmem>>, vector<16x32xbf16>
    %1 = arith.extf %0 : vector<16x32xbf16> to vector<16x32xf32>
    %cst = arith.constant dense<0.000000e+00> : vector<16xf32>
    %2 = vector.multi_reduction <add>, %1, %cst [1] : vector<16x32xf32> to vector<16xf32>
    %3 = vector.shape_cast %2 : vector<16xf32> to vector<16x1xf32>
    %cst_1 = arith.constant 3.200000e+01 : f32
    %4 = vector.broadcast %cst_1 : f32 to vector<16x1xf32>
    %5 = arith.divf %3, %4 : vector<16x1xf32>
    %6 = vector.broadcast %5 : vector<16x1xf32> to vector<16x32xf32>
    %7 = arith.subf %1, %6 : vector<16x32xf32>
    %8 = arith.mulf %7, %7 : vector<16x32xf32>
    %cst_2 = arith.constant dense<0.000000e+00> : vector<16xf32>
    %9 = vector.multi_reduction <add>, %8, %cst_2 [1] : vector<16x32xf32> to vector<16xf32>
    %10 = vector.shape_cast %9 : vector<16xf32> to vector<16x1xf32>
    %cst_3 = arith.constant 3.200000e+01 : f32
    %11 = vector.broadcast %cst_3 : f32 to vector<16x1xf32>
    %12 = arith.divf %10, %11 : vector<16x1xf32>
    %13 = vector.broadcast %5 : vector<16x1xf32> to vector<16x32xf32>
    %14 = arith.subf %1, %13 : vector<16x32xf32>
    %cst_4 = arith.constant 9.99999997E-7 : f32
    %15 = vector.broadcast %cst_4 : f32 to vector<16x1xf32>
    %16 = arith.addf %12, %15 : vector<16x1xf32>
    %17 = math.rsqrt %16 : vector<16x1xf32>
    %18 = vector.broadcast %17 : vector<16x1xf32> to vector<16x32xf32>
    %19 = arith.mulf %14, %18 : vector<16x32xf32>
    %c0_5 = arith.constant 0 : index
    %c0_6 = arith.constant 0 : index
    %20 = vector.load %arg2[%c0_5, %c0_6] : memref<1x32xf32, #tpu.memory_space<vmem>>, vector<1x32xf32>
    %21 = vector.broadcast %20 : vector<1x32xf32> to vector<16x32xf32>
    %22 = arith.mulf %19, %21 : vector<16x32xf32>
    %c0_7 = arith.constant 0 : index
    %c0_8 = arith.constant 0 : index
    %23 = vector.load %arg3[%c0_7, %c0_8] : memref<1x32xf32, #tpu.memory_space<vmem>>, vector<1x32xf32>
    %24 = vector.broadcast %23 : vector<1x32xf32> to vector<16x32xf32>
    %25 = arith.addf %22, %24 : vector<16x32xf32>
    %26 = arith.truncf %25 : vector<16x32xf32> to vector<16x32xbf16>
    %c0_9 = arith.constant 0 : index
    %c0_10 = arith.constant 0 : index
    %27 = vector.load %arg4[%c0_9, %c0_10] : memref<16x32xbf16, #tpu.memory_space<vmem>>, vector<16x32xbf16>
    tpu.vector_store %arg4[%c0_9, %c0_10], %26 {strides = array<i32>} : memref<16x32xbf16, #tpu.memory_space<vmem>>, vector<16x32xbf16>,
    return
  }
  func.func @transform_0(%arg0: i32) -> (i32, i32) {
    %c0_i32 = arith.constant 0 : i32
    %c0_i32_0 = arith.constant 0 : i32
    return %arg0, %c0_i32 : i32, i32
  }
  func.func @transform_1(%arg0: i32) -> (i32, i32) {
    %c0_i32 = arith.constant 0 : i32
    %c0_i32_0 = arith.constant 0 : i32
    %c0_i32_1 = arith.constant 0 : i32
    return %c0_i32, %c0_i32_0 : i32, i32
  }
  func.func @transform_2(%arg0: i32) -> (i32, i32) {
    %c0_i32 = arith.constant 0 : i32
    %c0_i32_0 = arith.constant 0 : i32
    %c0_i32_1 = arith.constant 0 : i32
    return %c0_i32, %c0_i32_0 : i32, i32
  }
  func.func @transform_3(%arg0: i32) -> (i32, i32) {
    %c0_i32 = arith.constant 0 : i32
    %c0_i32_0 = arith.constant 0 : i32
    return %arg0, %c0_i32 : i32, i32
  }
}

module attributes {stable_mosaic.version = 11 : i64} {
  func.func @_attention_kernel(%arg0: i32, %arg1: memref<1x8x96xbf16, #tpu.memory_space<vmem>>, %arg2: memref<1x1x8xf32, #tpu.memory_space<vmem>>, %arg3: memref<1x8x32xbf16, #tpu.memory_space<vmem>>) attributes {dimension_semantics = [#tpu.dimension_semantics<parallel>], iteration_bounds = array<i64: 2>, scalar_prefetch = 0 : i64, scratch_operands = 0 : i64, tpu.core_type = #tpu.core_type<tc>, window_params = [{transform_indices = @transform_0, window_bounds = array<i64: 1, 8, 96>}, {transform_indices = @transform_1, window_bounds = array<i64: 1, 1, 8>}, {transform_indices = @transform_2, window_bounds = array<i64: 1, 8, 32>}]} {
    %c0 = arith.constant 0 : index
    %c0_0 = arith.constant 0 : index
    %c0_1 = arith.constant 0 : index
    %0 = vector.load %arg2[%c0, %c0_0, %c0_1] : memref<1x1x8xf32, #tpu.memory_space<vmem>>, vector<1x1x8xf32>
    %1 = vector.shape_cast %0 : vector<1x1x8xf32> to vector<1x8xf32>
    %c0_2 = arith.constant 0 : index
    %c0_3 = arith.constant 0 : index
    %c0_4 = arith.constant 0 : index
    %2 = vector.load %arg1[%c0_2, %c0_3, %c0_4] : memref<1x8x96xbf16, #tpu.memory_space<vmem>>, vector<1x8x16xbf16>
    %3 = vector.shape_cast %2 : vector<1x8x16xbf16> to vector<8x16xbf16>
    %c0_5 = arith.constant 0 : index
    %c0_6 = arith.constant 0 : index
    %c32 = arith.constant 32 : index
    %4 = vector.load %arg1[%c0_5, %c0_6, %c32] : memref<1x8x96xbf16, #tpu.memory_space<vmem>>, vector<1x8x16xbf16>
    %5 = vector.shape_cast %4 : vector<1x8x16xbf16> to vector<8x16xbf16>
    %c0_7 = arith.constant 0 : index
    %c0_8 = arith.constant 0 : index
    %c64 = arith.constant 64 : index
    %6 = vector.load %arg1[%c0_7, %c0_8, %c64] : memref<1x8x96xbf16, #tpu.memory_space<vmem>>, vector<1x8x16xbf16>
    %7 = vector.shape_cast %6 : vector<1x8x16xbf16> to vector<8x16xbf16>
    %8 = tpu.transpose %5, [1, 0] : vector<8x16xbf16> -> vector<16x8xbf16>
    %cst = arith.constant dense<0.000000e+00> : vector<8x8xf32>
    %9 = tpu.matmul %3, %8, %cst {dimension_numbers = #tpu.dot_dimension_numbers<[1], [0], [0], [1], [0, 0, 1, 1], [], []>} : vector<8x16xbf16>, vector<16x8xbf16>, vector<8x8xf32> -> vector<8x8xf32>
    %cst_9 = arith.constant 2.500000e-01 : f32
    %10 = vector.broadcast %cst_9 : f32 to vector<8x8xf32>
    %11 = arith.mulf %9, %10 : vector<8x8xf32>
    %cst_10 = arith.constant 0.000000e+00 : f32
    %12 = vector.broadcast %cst_10 : f32 to vector<1x8xf32>
    %13 = arith.cmpf ogt, %1, %12 : vector<1x8xf32>
    %cst_11 = arith.constant -1.000000e+09 : f32
    %14 = vector.shape_cast %13 : vector<1x8xi1> to vector<1x8xi1>
    %15 = vector.broadcast %14 : vector<1x8xi1> to vector<8x8xi1>
    %16 = vector.broadcast %cst_11 : f32 to vector<8x8xf32>
    %17 = arith.select %15, %11, %16 : vector<8x8xi1>, vector<8x8xf32>
    %cst_12 = arith.constant dense<0xFF800000> : vector<8xf32>
    %18 = vector.multi_reduction <maximumf>, %17, %cst_12 [1] : vector<8x8xf32> to vector<8xf32>
    %19 = vector.shape_cast %18 : vector<8xf32> to vector<8x1xf32>
    %20 = vector.broadcast %19 : vector<8x1xf32> to vector<8x8xf32>
    %21 = arith.subf %17, %20 : vector<8x8xf32>
    %22 = math.exp %21 : vector<8x8xf32>
    %cst_13 = arith.constant dense<0.000000e+00> : vector<8xf32>
    %23 = vector.multi_reduction <add>, %22, %cst_13 [1] : vector<8x8xf32> to vector<8xf32>
    %24 = vector.shape_cast %23 : vector<8xf32> to vector<8x1xf32>
    %25 = tpu.reciprocal %24 {approx = true} : vector<8x1xf32> -> vector<8x1xf32>
    %26 = vector.broadcast %25 : vector<8x1xf32> to vector<8x8xf32>
    %27 = arith.mulf %22, %26 : vector<8x8xf32>
    %28 = arith.truncf %27 : vector<8x8xf32> to vector<8x8xbf16>
    %cst_14 = arith.constant dense<0.000000e+00> : vector<8x16xf32>
    %29 = tpu.matmul %28, %7, %cst_14 {dimension_numbers = #tpu.dot_dimension_numbers<[1], [0], [0], [1], [0, 0, 1, 1], [], []>} : vector<8x8xbf16>, vector<8x16xbf16>, vector<8x16xf32> -> vector<8x16xf32>
    %30 = arith.truncf %29 : vector<8x16xf32> to vector<8x16xbf16>
    %c0_15 = arith.constant 0 : index
    %c0_16 = arith.constant 0 : index
    %c0_17 = arith.constant 0 : index
    %31 = vector.load %arg3[%c0_15, %c0_16, %c0_17] : memref<1x8x32xbf16, #tpu.memory_space<vmem>>, vector<1x8x16xbf16>
    %32 = vector.shape_cast %31 : vector<1x8x16xbf16> to vector<8x16xbf16>
    %33 = vector.shape_cast %30 : vector<8x16xbf16> to vector<1x8x16xbf16>
    tpu.vector_store %arg3[%c0_15, %c0_16, %c0_17], %33 {strides = array<i32>} : memref<1x8x32xbf16, #tpu.memory_space<vmem>>, vector<1x8x16xbf16>,
    %c0_18 = arith.constant 0 : index
    %c0_19 = arith.constant 0 : index
    %c16 = arith.constant 16 : index
    %34 = vector.load %arg1[%c0_18, %c0_19, %c16] : memref<1x8x96xbf16, #tpu.memory_space<vmem>>, vector<1x8x16xbf16>
    %35 = vector.shape_cast %34 : vector<1x8x16xbf16> to vector<8x16xbf16>
    %c0_20 = arith.constant 0 : index
    %c0_21 = arith.constant 0 : index
    %c48 = arith.constant 48 : index
    %36 = vector.load %arg1[%c0_20, %c0_21, %c48] : memref<1x8x96xbf16, #tpu.memory_space<vmem>>, vector<1x8x16xbf16>
    %37 = vector.shape_cast %36 : vector<1x8x16xbf16> to vector<8x16xbf16>
    %c0_22 = arith.constant 0 : index
    %c0_23 = arith.constant 0 : index
    %c80 = arith.constant 80 : index
    %38 = vector.load %arg1[%c0_22, %c0_23, %c80] : memref<1x8x96xbf16, #tpu.memory_space<vmem>>, vector<1x8x16xbf16>
    %39 = vector.shape_cast %38 : vector<1x8x16xbf16> to vector<8x16xbf16>
    %40 = tpu.transpose %37, [1, 0] : vector<8x16xbf16> -> vector<16x8xbf16>
    %cst_24 = arith.constant dense<0.000000e+00> : vector<8x8xf32>
    %41 = tpu.matmul %35, %40, %cst_24 {dimension_numbers = #tpu.dot_dimension_numbers<[1], [0], [0], [1], [0, 0, 1, 1], [], []>} : vector<8x16xbf16>, vector<16x8xbf16>, vector<8x8xf32> -> vector<8x8xf32>
    %cst_25 = arith.constant 2.500000e-01 : f32
    %42 = vector.broadcast %cst_25 : f32 to vector<8x8xf32>
    %43 = arith.mulf %41, %42 : vector<8x8xf32>
    %cst_26 = arith.constant 0.000000e+00 : f32
    %44 = vector.broadcast %cst_26 : f32 to vector<1x8xf32>
    %45 = arith.cmpf ogt, %1, %44 : vector<1x8xf32>
    %cst_27 = arith.constant -1.000000e+09 : f32
    %46 = vector.shape_cast %45 : vector<1x8xi1> to vector<1x8xi1>
    %47 = vector.broadcast %46 : vector<1x8xi1> to vector<8x8xi1>
    %48 = vector.broadcast %cst_27 : f32 to vector<8x8xf32>
    %49 = arith.select %47, %43, %48 : vector<8x8xi1>, vector<8x8xf32>
    %cst_28 = arith.constant dense<0xFF800000> : vector<8xf32>
    %50 = vector.multi_reduction <maximumf>, %49, %cst_28 [1] : vector<8x8xf32> to vector<8xf32>
    %51 = vector.shape_cast %50 : vector<8xf32> to vector<8x1xf32>
    %52 = vector.broadcast %51 : vector<8x1xf32> to vector<8x8xf32>
    %53 = arith.subf %49, %52 : vector<8x8xf32>
    %54 = math.exp %53 : vector<8x8xf32>
    %cst_29 = arith.constant dense<0.000000e+00> : vector<8xf32>
    %55 = vector.multi_reduction <add>, %54, %cst_29 [1] : vector<8x8xf32> to vector<8xf32>
    %56 = vector.shape_cast %55 : vector<8xf32> to vector<8x1xf32>
    %57 = tpu.reciprocal %56 {approx = true} : vector<8x1xf32> -> vector<8x1xf32>
    %58 = vector.broadcast %57 : vector<8x1xf32> to vector<8x8xf32>
    %59 = arith.mulf %54, %58 : vector<8x8xf32>
    %60 = arith.truncf %59 : vector<8x8xf32> to vector<8x8xbf16>
    %cst_30 = arith.constant dense<0.000000e+00> : vector<8x16xf32>
    %61 = tpu.matmul %60, %39, %cst_30 {dimension_numbers = #tpu.dot_dimension_numbers<[1], [0], [0], [1], [0, 0, 1, 1], [], []>} : vector<8x8xbf16>, vector<8x16xbf16>, vector<8x16xf32> -> vector<8x16xf32>
    %62 = arith.truncf %61 : vector<8x16xf32> to vector<8x16xbf16>
    %c0_31 = arith.constant 0 : index
    %c0_32 = arith.constant 0 : index
    %c16_33 = arith.constant 16 : index
    %63 = vector.load %arg3[%c0_31, %c0_32, %c16_33] : memref<1x8x32xbf16, #tpu.memory_space<vmem>>, vector<1x8x16xbf16>
    %64 = vector.shape_cast %63 : vector<1x8x16xbf16> to vector<8x16xbf16>
    %65 = vector.shape_cast %62 : vector<8x16xbf16> to vector<1x8x16xbf16>
    tpu.vector_store %arg3[%c0_31, %c0_32, %c16_33], %65 {strides = array<i32>} : memref<1x8x32xbf16, #tpu.memory_space<vmem>>, vector<1x8x16xbf16>,
    return
  }
  func.func @transform_0(%arg0: i32) -> (i32, i32, i32) {
    %c0_i32 = arith.constant 0 : i32
    %c0_i32_0 = arith.constant 0 : i32
    %c0_i32_1 = arith.constant 0 : i32
    return %arg0, %c0_i32, %c0_i32_0 : i32, i32, i32
  }
  func.func @transform_1(%arg0: i32) -> (i32, i32, i32) {
    %c0_i32 = arith.constant 0 : i32
    %c0_i32_0 = arith.constant 0 : i32
    %c0_i32_1 = arith.constant 0 : i32
    return %arg0, %c0_i32, %c0_i32_0 : i32, i32, i32
  }
  func.func @transform_2(%arg0: i32) -> (i32, i32, i32) {
    %c0_i32 = arith.constant 0 : i32
    %c0_i32_0 = arith.constant 0 : i32
    %c0_i32_1 = arith.constant 0 : i32
    return %arg0, %c0_i32, %c0_i32_0 : i32, i32, i32
  }
}

module attributes {stable_mosaic.version = 11 : i64} {
  func.func @_matmul_res_ln_kernel(%arg0: i32, %arg1: i32, %arg2: memref<16x32xbf16, #tpu.memory_space<vmem>>, %arg3: memref<32x32xbf16, #tpu.memory_space<vmem>>, %arg4: memref<1x32xf32, #tpu.memory_space<vmem>>, %arg5: memref<16x32xbf16, #tpu.memory_space<vmem>>, %arg6: memref<1x32xf32, #tpu.memory_space<vmem>>, %arg7: memref<1x32xf32, #tpu.memory_space<vmem>>, %arg8: memref<16x32xbf16, #tpu.memory_space<vmem>>, %arg9: memref<16x32xbf16, #tpu.memory_space<vmem>>, %arg10: memref<16x32xf32, #tpu.memory_space<vmem>>) attributes {dimension_semantics = [#tpu.dimension_semantics<parallel>, #tpu.dimension_semantics<arbitrary>], iteration_bounds = array<i64: 1, 1>, scalar_prefetch = 0 : i64, scratch_operands = 1 : i64, tpu.core_type = #tpu.core_type<tc>, window_params = [{transform_indices = @transform_0, window_bounds = array<i64: 16, 32>}, {transform_indices = @transform_1, window_bounds = array<i64: 32, 32>}, {pipeline_mode = #tpu.pipeline_mode<synchronous>, transform_indices = @transform_2, window_bounds = array<i64: 1, 32>}, {transform_indices = @transform_3, window_bounds = array<i64: 16, 32>}, {pipeline_mode = #tpu.pipeline_mode<synchronous>, transform_indices = @transform_4, window_bounds = array<i64: 1, 32>}, {pipeline_mode = #tpu.pipeline_mode<synchronous>, transform_indices = @transform_5, window_bounds = array<i64: 1, 32>}, {transform_indices = @transform_6, window_bounds = array<i64: 16, 32>}, {transform_indices = @transform_7, window_bounds = array<i64: 16, 32>}]} {
    %c0_i32 = arith.constant 0 : i32
    %0 = arith.cmpi eq, %arg1, %c0_i32 : i32
    %1 = arith.extui %0 : i1 to i32
    %c0_i32_0 = arith.constant 0 : i32
    %2 = arith.cmpi ne, %1, %c0_i32_0 : i32
    scf.if %2 {
      %cst_10 = arith.constant 0.000000e+00 : f32
      %12 = vector.broadcast %cst_10 : f32 to vector<16x32xf32>
      %c0_11 = arith.constant 0 : index
      %c0_12 = arith.constant 0 : index
      %13 = vector.load %arg10[%c0_11, %c0_12] : memref<16x32xf32, #tpu.memory_space<vmem>>, vector<16x32xf32>
      tpu.vector_store %arg10[%c0_11, %c0_12], %12 {strides = array<i32>} : memref<16x32xf32, #tpu.memory_space<vmem>>, vector<16x32xf32>,
    } else {
    }
    %c0 = arith.constant 0 : index
    %c0_1 = arith.constant 0 : index
    %3 = vector.load %arg10[%c0, %c0_1] : memref<16x32xf32, #tpu.memory_space<vmem>>, vector<16x32xf32>
    %c0_2 = arith.constant 0 : index
    %c0_3 = arith.constant 0 : index
    %4 = vector.load %arg2[%c0_2, %c0_3] : memref<16x32xbf16, #tpu.memory_space<vmem>>, vector<16x32xbf16>
    %c0_4 = arith.constant 0 : index
    %c0_5 = arith.constant 0 : index
    %5 = vector.load %arg3[%c0_4, %c0_5] : memref<32x32xbf16, #tpu.memory_space<vmem>>, vector<32x32xbf16>
    %cst = arith.constant dense<0.000000e+00> : vector<16x32xf32>
    %6 = tpu.matmul %4, %5, %cst {dimension_numbers = #tpu.dot_dimension_numbers<[1], [0], [0], [1], [0, 0, 1, 1], [], []>} : vector<16x32xbf16>, vector<32x32xbf16>, vector<16x32xf32> -> vector<16x32xf32>
    %7 = arith.addf %3, %6 : vector<16x32xf32>
    %c0_6 = arith.constant 0 : index
    %c0_7 = arith.constant 0 : index
    %8 = vector.load %arg10[%c0_6, %c0_7] : memref<16x32xf32, #tpu.memory_space<vmem>>, vector<16x32xf32>
    tpu.vector_store %arg10[%c0_6, %c0_7], %7 {strides = array<i32>} : memref<16x32xf32, #tpu.memory_space<vmem>>, vector<16x32xf32>,
    %c0_i32_8 = arith.constant 0 : i32
    %9 = arith.cmpi eq, %arg1, %c0_i32_8 : i32
    %10 = arith.extui %9 : i1 to i32
    %c0_i32_9 = arith.constant 0 : i32
    %11 = arith.cmpi ne, %10, %c0_i32_9 : i32
    scf.if %11 {
      %c0_10 = arith.constant 0 : index
      %c0_11 = arith.constant 0 : index
      %12 = vector.load %arg10[%c0_10, %c0_11] : memref<16x32xf32, #tpu.memory_space<vmem>>, vector<16x32xf32>
      %c0_12 = arith.constant 0 : index
      %c0_13 = arith.constant 0 : index
      %13 = vector.load %arg4[%c0_12, %c0_13] : memref<1x32xf32, #tpu.memory_space<vmem>>, vector<1x32xf32>
      %14 = vector.broadcast %13 : vector<1x32xf32> to vector<16x32xf32>
      %15 = arith.addf %12, %14 : vector<16x32xf32>
      %c0_14 = arith.constant 0 : index
      %c0_15 = arith.constant 0 : index
      %16 = vector.load %arg5[%c0_14, %c0_15] : memref<16x32xbf16, #tpu.memory_space<vmem>>, vector<16x32xbf16>
      %17 = arith.extf %16 : vector<16x32xbf16> to vector<16x32xf32>
      %18 = arith.addf %15, %17 : vector<16x32xf32>
      %19 = arith.truncf %18 : vector<16x32xf32> to vector<16x32xbf16>
      %c0_16 = arith.constant 0 : index
      %c0_17 = arith.constant 0 : index
      %20 = vector.load %arg8[%c0_16, %c0_17] : memref<16x32xbf16, #tpu.memory_space<vmem>>, vector<16x32xbf16>
      tpu.vector_store %arg8[%c0_16, %c0_17], %19 {strides = array<i32>} : memref<16x32xbf16, #tpu.memory_space<vmem>>, vector<16x32xbf16>,
      %cst_18 = arith.constant dense<0.000000e+00> : vector<16xf32>
      %21 = vector.multi_reduction <add>, %18, %cst_18 [1] : vector<16x32xf32> to vector<16xf32>
      %22 = vector.shape_cast %21 : vector<16xf32> to vector<16x1xf32>
      %cst_19 = arith.constant 3.200000e+01 : f32
      %23 = vector.broadcast %cst_19 : f32 to vector<16x1xf32>
      %24 = arith.divf %22, %23 : vector<16x1xf32>
      %25 = vector.broadcast %24 : vector<16x1xf32> to vector<16x32xf32>
      %26 = arith.subf %18, %25 : vector<16x32xf32>
      %27 = arith.mulf %26, %26 : vector<16x32xf32>
      %cst_20 = arith.constant dense<0.000000e+00> : vector<16xf32>
      %28 = vector.multi_reduction <add>, %27, %cst_20 [1] : vector<16x32xf32> to vector<16xf32>
      %29 = vector.shape_cast %28 : vector<16xf32> to vector<16x1xf32>
      %cst_21 = arith.constant 3.200000e+01 : f32
      %30 = vector.broadcast %cst_21 : f32 to vector<16x1xf32>
      %31 = arith.divf %29, %30 : vector<16x1xf32>
      %32 = vector.broadcast %24 : vector<16x1xf32> to vector<16x32xf32>
      %33 = arith.subf %18, %32 : vector<16x32xf32>
      %cst_22 = arith.constant 9.99999997E-7 : f32
      %34 = vector.broadcast %cst_22 : f32 to vector<16x1xf32>
      %35 = arith.addf %31, %34 : vector<16x1xf32>
      %36 = math.rsqrt %35 : vector<16x1xf32>
      %37 = vector.broadcast %36 : vector<16x1xf32> to vector<16x32xf32>
      %38 = arith.mulf %33, %37 : vector<16x32xf32>
      %c0_23 = arith.constant 0 : index
      %c0_24 = arith.constant 0 : index
      %39 = vector.load %arg6[%c0_23, %c0_24] : memref<1x32xf32, #tpu.memory_space<vmem>>, vector<1x32xf32>
      %40 = vector.broadcast %39 : vector<1x32xf32> to vector<16x32xf32>
      %41 = arith.mulf %38, %40 : vector<16x32xf32>
      %c0_25 = arith.constant 0 : index
      %c0_26 = arith.constant 0 : index
      %42 = vector.load %arg7[%c0_25, %c0_26] : memref<1x32xf32, #tpu.memory_space<vmem>>, vector<1x32xf32>
      %43 = vector.broadcast %42 : vector<1x32xf32> to vector<16x32xf32>
      %44 = arith.addf %41, %43 : vector<16x32xf32>
      %45 = arith.truncf %44 : vector<16x32xf32> to vector<16x32xbf16>
      %c0_27 = arith.constant 0 : index
      %c0_28 = arith.constant 0 : index
      %46 = vector.load %arg9[%c0_27, %c0_28] : memref<16x32xbf16, #tpu.memory_space<vmem>>, vector<16x32xbf16>
      tpu.vector_store %arg9[%c0_27, %c0_28], %45 {strides = array<i32>} : memref<16x32xbf16, #tpu.memory_space<vmem>>, vector<16x32xbf16>,
    } else {
    }
    return
  }
  func.func @transform_0(%arg0: i32, %arg1: i32) -> (i32, i32) {
    %c0_i32 = arith.constant 0 : i32
    return %arg0, %arg1 : i32, i32
  }
  func.func @transform_1(%arg0: i32, %arg1: i32) -> (i32, i32) {
    %c0_i32 = arith.constant 0 : i32
    %c0_i32_0 = arith.constant 0 : i32
    return %arg1, %c0_i32 : i32, i32
  }
  func.func @transform_2(%arg0: i32, %arg1: i32) -> (i32, i32) {
    %c0_i32 = arith.constant 0 : i32
    %c0_i32_0 = arith.constant 0 : i32
    %c0_i32_1 = arith.constant 0 : i32
    return %c0_i32, %c0_i32_0 : i32, i32
  }
  func.func @transform_3(%arg0: i32, %arg1: i32) -> (i32, i32) {
    %c0_i32 = arith.constant 0 : i32
    %c0_i32_0 = arith.constant 0 : i32
    return %arg0, %c0_i32 : i32, i32
  }
  func.func @transform_4(%arg0: i32, %arg1: i32) -> (i32, i32) {
    %c0_i32 = arith.constant 0 : i32
    %c0_i32_0 = arith.constant 0 : i32
    %c0_i32_1 = arith.constant 0 : i32
    return %c0_i32, %c0_i32_0 : i32, i32
  }
  func.func @transform_5(%arg0: i32, %arg1: i32) -> (i32, i32) {
    %c0_i32 = arith.constant 0 : i32
    %c0_i32_0 = arith.constant 0 : i32
    %c0_i32_1 = arith.constant 0 : i32
    return %c0_i32, %c0_i32_0 : i32, i32
  }
  func.func @transform_6(%arg0: i32, %arg1: i32) -> (i32, i32) {
    %c0_i32 = arith.constant 0 : i32
    %c0_i32_0 = arith.constant 0 : i32
    return %arg0, %c0_i32 : i32, i32
  }
  func.func @transform_7(%arg0: i32, %arg1: i32) -> (i32, i32) {
    %c0_i32 = arith.constant 0 : i32
    %c0_i32_0 = arith.constant 0 : i32
    return %arg0, %c0_i32 : i32, i32
  }
}

module attributes {stable_mosaic.version = 11 : i64} {
  func.func @_matmul_res_ln_kernel(%arg0: i32, %arg1: i32, %arg2: memref<16x128xbf16, #tpu.memory_space<vmem>>, %arg3: memref<128x32xbf16, #tpu.memory_space<vmem>>, %arg4: memref<1x32xf32, #tpu.memory_space<vmem>>, %arg5: memref<16x32xbf16, #tpu.memory_space<vmem>>, %arg6: memref<1x32xf32, #tpu.memory_space<vmem>>, %arg7: memref<1x32xf32, #tpu.memory_space<vmem>>, %arg8: memref<16x32xbf16, #tpu.memory_space<vmem>>, %arg9: memref<16x32xbf16, #tpu.memory_space<vmem>>, %arg10: memref<16x32xf32, #tpu.memory_space<vmem>>) attributes {dimension_semantics = [#tpu.dimension_semantics<parallel>, #tpu.dimension_semantics<arbitrary>], iteration_bounds = array<i64: 1, 1>, scalar_prefetch = 0 : i64, scratch_operands = 1 : i64, tpu.core_type = #tpu.core_type<tc>, window_params = [{transform_indices = @transform_0, window_bounds = array<i64: 16, 128>}, {transform_indices = @transform_1, window_bounds = array<i64: 128, 32>}, {pipeline_mode = #tpu.pipeline_mode<synchronous>, transform_indices = @transform_2, window_bounds = array<i64: 1, 32>}, {transform_indices = @transform_3, window_bounds = array<i64: 16, 32>}, {pipeline_mode = #tpu.pipeline_mode<synchronous>, transform_indices = @transform_4, window_bounds = array<i64: 1, 32>}, {pipeline_mode = #tpu.pipeline_mode<synchronous>, transform_indices = @transform_5, window_bounds = array<i64: 1, 32>}, {transform_indices = @transform_6, window_bounds = array<i64: 16, 32>}, {transform_indices = @transform_7, window_bounds = array<i64: 16, 32>}]} {
    %c0_i32 = arith.constant 0 : i32
    %0 = arith.cmpi eq, %arg1, %c0_i32 : i32
    %1 = arith.extui %0 : i1 to i32
    %c0_i32_0 = arith.constant 0 : i32
    %2 = arith.cmpi ne, %1, %c0_i32_0 : i32
    scf.if %2 {
      %cst_10 = arith.constant 0.000000e+00 : f32
      %12 = vector.broadcast %cst_10 : f32 to vector<16x32xf32>
      %c0_11 = arith.constant 0 : index
      %c0_12 = arith.constant 0 : index
      %13 = vector.load %arg10[%c0_11, %c0_12] : memref<16x32xf32, #tpu.memory_space<vmem>>, vector<16x32xf32>
      tpu.vector_store %arg10[%c0_11, %c0_12], %12 {strides = array<i32>} : memref<16x32xf32, #tpu.memory_space<vmem>>, vector<16x32xf32>,
    } else {
    }
    %c0 = arith.constant 0 : index
    %c0_1 = arith.constant 0 : index
    %3 = vector.load %arg10[%c0, %c0_1] : memref<16x32xf32, #tpu.memory_space<vmem>>, vector<16x32xf32>
    %c0_2 = arith.constant 0 : index
    %c0_3 = arith.constant 0 : index
    %4 = vector.load %arg2[%c0_2, %c0_3] : memref<16x128xbf16, #tpu.memory_space<vmem>>, vector<16x128xbf16>
    %c0_4 = arith.constant 0 : index
    %c0_5 = arith.constant 0 : index
    %5 = vector.load %arg3[%c0_4, %c0_5] : memref<128x32xbf16, #tpu.memory_space<vmem>>, vector<128x32xbf16>
    %cst = arith.constant dense<0.000000e+00> : vector<16x32xf32>
    %6 = tpu.matmul %4, %5, %cst {dimension_numbers = #tpu.dot_dimension_numbers<[1], [0], [0], [1], [0, 0, 1, 1], [], []>} : vector<16x128xbf16>, vector<128x32xbf16>, vector<16x32xf32> -> vector<16x32xf32>
    %7 = arith.addf %3, %6 : vector<16x32xf32>
    %c0_6 = arith.constant 0 : index
    %c0_7 = arith.constant 0 : index
    %8 = vector.load %arg10[%c0_6, %c0_7] : memref<16x32xf32, #tpu.memory_space<vmem>>, vector<16x32xf32>
    tpu.vector_store %arg10[%c0_6, %c0_7], %7 {strides = array<i32>} : memref<16x32xf32, #tpu.memory_space<vmem>>, vector<16x32xf32>,
    %c0_i32_8 = arith.constant 0 : i32
    %9 = arith.cmpi eq, %arg1, %c0_i32_8 : i32
    %10 = arith.extui %9 : i1 to i32
    %c0_i32_9 = arith.constant 0 : i32
    %11 = arith.cmpi ne, %10, %c0_i32_9 : i32
    scf.if %11 {
      %c0_10 = arith.constant 0 : index
      %c0_11 = arith.constant 0 : index
      %12 = vector.load %arg10[%c0_10, %c0_11] : memref<16x32xf32, #tpu.memory_space<vmem>>, vector<16x32xf32>
      %c0_12 = arith.constant 0 : index
      %c0_13 = arith.constant 0 : index
      %13 = vector.load %arg4[%c0_12, %c0_13] : memref<1x32xf32, #tpu.memory_space<vmem>>, vector<1x32xf32>
      %14 = vector.broadcast %13 : vector<1x32xf32> to vector<16x32xf32>
      %15 = arith.addf %12, %14 : vector<16x32xf32>
      %c0_14 = arith.constant 0 : index
      %c0_15 = arith.constant 0 : index
      %16 = vector.load %arg5[%c0_14, %c0_15] : memref<16x32xbf16, #tpu.memory_space<vmem>>, vector<16x32xbf16>
      %17 = arith.extf %16 : vector<16x32xbf16> to vector<16x32xf32>
      %18 = arith.addf %15, %17 : vector<16x32xf32>
      %19 = arith.truncf %18 : vector<16x32xf32> to vector<16x32xbf16>
      %c0_16 = arith.constant 0 : index
      %c0_17 = arith.constant 0 : index
      %20 = vector.load %arg8[%c0_16, %c0_17] : memref<16x32xbf16, #tpu.memory_space<vmem>>, vector<16x32xbf16>
      tpu.vector_store %arg8[%c0_16, %c0_17], %19 {strides = array<i32>} : memref<16x32xbf16, #tpu.memory_space<vmem>>, vector<16x32xbf16>,
      %cst_18 = arith.constant dense<0.000000e+00> : vector<16xf32>
      %21 = vector.multi_reduction <add>, %18, %cst_18 [1] : vector<16x32xf32> to vector<16xf32>
      %22 = vector.shape_cast %21 : vector<16xf32> to vector<16x1xf32>
      %cst_19 = arith.constant 3.200000e+01 : f32
      %23 = vector.broadcast %cst_19 : f32 to vector<16x1xf32>
      %24 = arith.divf %22, %23 : vector<16x1xf32>
      %25 = vector.broadcast %24 : vector<16x1xf32> to vector<16x32xf32>
      %26 = arith.subf %18, %25 : vector<16x32xf32>
      %27 = arith.mulf %26, %26 : vector<16x32xf32>
      %cst_20 = arith.constant dense<0.000000e+00> : vector<16xf32>
      %28 = vector.multi_reduction <add>, %27, %cst_20 [1] : vector<16x32xf32> to vector<16xf32>
      %29 = vector.shape_cast %28 : vector<16xf32> to vector<16x1xf32>
      %cst_21 = arith.constant 3.200000e+01 : f32
      %30 = vector.broadcast %cst_21 : f32 to vector<16x1xf32>
      %31 = arith.divf %29, %30 : vector<16x1xf32>
      %32 = vector.broadcast %24 : vector<16x1xf32> to vector<16x32xf32>
      %33 = arith.subf %18, %32 : vector<16x32xf32>
      %cst_22 = arith.constant 9.99999997E-7 : f32
      %34 = vector.broadcast %cst_22 : f32 to vector<16x1xf32>
      %35 = arith.addf %31, %34 : vector<16x1xf32>
      %36 = math.rsqrt %35 : vector<16x1xf32>
      %37 = vector.broadcast %36 : vector<16x1xf32> to vector<16x32xf32>
      %38 = arith.mulf %33, %37 : vector<16x32xf32>
      %c0_23 = arith.constant 0 : index
      %c0_24 = arith.constant 0 : index
      %39 = vector.load %arg6[%c0_23, %c0_24] : memref<1x32xf32, #tpu.memory_space<vmem>>, vector<1x32xf32>
      %40 = vector.broadcast %39 : vector<1x32xf32> to vector<16x32xf32>
      %41 = arith.mulf %38, %40 : vector<16x32xf32>
      %c0_25 = arith.constant 0 : index
      %c0_26 = arith.constant 0 : index
      %42 = vector.load %arg7[%c0_25, %c0_26] : memref<1x32xf32, #tpu.memory_space<vmem>>, vector<1x32xf32>
      %43 = vector.broadcast %42 : vector<1x32xf32> to vector<16x32xf32>
      %44 = arith.addf %41, %43 : vector<16x32xf32>
      %45 = arith.truncf %44 : vector<16x32xf32> to vector<16x32xbf16>
      %c0_27 = arith.constant 0 : index
      %c0_28 = arith.constant 0 : index
      %46 = vector.load %arg9[%c0_27, %c0_28] : memref<16x32xbf16, #tpu.memory_space<vmem>>, vector<16x32xbf16>
      tpu.vector_store %arg9[%c0_27, %c0_28], %45 {strides = array<i32>} : memref<16x32xbf16, #tpu.memory_space<vmem>>, vector<16x32xbf16>,
    } else {
    }
    return
  }
  func.func @transform_0(%arg0: i32, %arg1: i32) -> (i32, i32) {
    %c0_i32 = arith.constant 0 : i32
    return %arg0, %arg1 : i32, i32
  }
  func.func @transform_1(%arg0: i32, %arg1: i32) -> (i32, i32) {
    %c0_i32 = arith.constant 0 : i32
    %c0_i32_0 = arith.constant 0 : i32
    return %arg1, %c0_i32 : i32, i32
  }
  func.func @transform_2(%arg0: i32, %arg1: i32) -> (i32, i32) {
    %c0_i32 = arith.constant 0 : i32
    %c0_i32_0 = arith.constant 0 : i32
    %c0_i32_1 = arith.constant 0 : i32
    return %c0_i32, %c0_i32_0 : i32, i32
  }
  func.func @transform_3(%arg0: i32, %arg1: i32) -> (i32, i32) {
    %c0_i32 = arith.constant 0 : i32
    %c0_i32_0 = arith.constant 0 : i32
    return %arg0, %c0_i32 : i32, i32
  }
  func.func @transform_4(%arg0: i32, %arg1: i32) -> (i32, i32) {
    %c0_i32 = arith.constant 0 : i32
    %c0_i32_0 = arith.constant 0 : i32
    %c0_i32_1 = arith.constant 0 : i32
    return %c0_i32, %c0_i32_0 : i32, i32
  }
  func.func @transform_5(%arg0: i32, %arg1: i32) -> (i32, i32) {
    %c0_i32 = arith.constant 0 : i32
    %c0_i32_0 = arith.constant 0 : i32
    %c0_i32_1 = arith.constant 0 : i32
    return %c0_i32, %c0_i32_0 : i32, i32
  }
  func.func @transform_6(%arg0: i32, %arg1: i32) -> (i32, i32) {
    %c0_i32 = arith.constant 0 : i32
    %c0_i32_0 = arith.constant 0 : i32
    return %arg0, %c0_i32 : i32, i32
  }
  func.func @transform_7(%arg0: i32, %arg1: i32) -> (i32, i32) {
    %c0_i32 = arith.constant 0 : i32
    %c0_i32_0 = arith.constant 0 : i32
    return %arg0, %c0_i32 : i32, i32
  }
}

module attributes {stable_mosaic.version = 11 : i64} {
  func.func @_matmul_kernel(%arg0: i32, %arg1: i32, %arg2: i32, %arg3: memref<16x128xbf16, #tpu.memory_space<vmem>>, %arg4: memref<128x32xbf16, #tpu.memory_space<vmem>>, %arg5: memref<1x32xf32, #tpu.memory_space<vmem>>, %arg6: memref<16x32xbf16, #tpu.memory_space<vmem>>, %arg7: memref<16x32xbf16, #tpu.memory_space<vmem>>, %arg8: memref<16x32xf32, #tpu.memory_space<vmem>>) attributes {dimension_semantics = [#tpu.dimension_semantics<parallel>, #tpu.dimension_semantics<parallel>, #tpu.dimension_semantics<arbitrary>], iteration_bounds = array<i64: 1, 1, 1>, scalar_prefetch = 0 : i64, scratch_operands = 1 : i64, tpu.core_type = #tpu.core_type<tc>, window_params = [{transform_indices = @transform_0, window_bounds = array<i64: 16, 128>}, {transform_indices = @transform_1, window_bounds = array<i64: 128, 32>}, {transform_indices = @transform_2, window_bounds = array<i64: 1, 32>}, {transform_indices = @transform_3, window_bounds = array<i64: 16, 32>}, {transform_indices = @transform_4, window_bounds = array<i64: 16, 32>}]} {
    %c0_i32 = arith.constant 0 : i32
    %0 = arith.cmpi eq, %arg2, %c0_i32 : i32
    %1 = arith.extui %0 : i1 to i32
    %c0_i32_0 = arith.constant 0 : i32
    %2 = arith.cmpi ne, %1, %c0_i32_0 : i32
    scf.if %2 {
      %cst_10 = arith.constant 0.000000e+00 : f32
      %12 = vector.broadcast %cst_10 : f32 to vector<16x32xf32>
      %c0_11 = arith.constant 0 : index
      %c0_12 = arith.constant 0 : index
      %13 = vector.load %arg8[%c0_11, %c0_12] : memref<16x32xf32, #tpu.memory_space<vmem>>, vector<16x32xf32>
      tpu.vector_store %arg8[%c0_11, %c0_12], %12 {strides = array<i32>} : memref<16x32xf32, #tpu.memory_space<vmem>>, vector<16x32xf32>,
    } else {
    }
    %c0 = arith.constant 0 : index
    %c0_1 = arith.constant 0 : index
    %3 = vector.load %arg8[%c0, %c0_1] : memref<16x32xf32, #tpu.memory_space<vmem>>, vector<16x32xf32>
    %c0_2 = arith.constant 0 : index
    %c0_3 = arith.constant 0 : index
    %4 = vector.load %arg3[%c0_2, %c0_3] : memref<16x128xbf16, #tpu.memory_space<vmem>>, vector<16x128xbf16>
    %c0_4 = arith.constant 0 : index
    %c0_5 = arith.constant 0 : index
    %5 = vector.load %arg4[%c0_4, %c0_5] : memref<128x32xbf16, #tpu.memory_space<vmem>>, vector<128x32xbf16>
    %cst = arith.constant dense<0.000000e+00> : vector<16x32xf32>
    %6 = tpu.matmul %4, %5, %cst {dimension_numbers = #tpu.dot_dimension_numbers<[1], [0], [0], [1], [0, 0, 1, 1], [], []>} : vector<16x128xbf16>, vector<128x32xbf16>, vector<16x32xf32> -> vector<16x32xf32>
    %7 = arith.addf %3, %6 : vector<16x32xf32>
    %c0_6 = arith.constant 0 : index
    %c0_7 = arith.constant 0 : index
    %8 = vector.load %arg8[%c0_6, %c0_7] : memref<16x32xf32, #tpu.memory_space<vmem>>, vector<16x32xf32>
    tpu.vector_store %arg8[%c0_6, %c0_7], %7 {strides = array<i32>} : memref<16x32xf32, #tpu.memory_space<vmem>>, vector<16x32xf32>,
    %c0_i32_8 = arith.constant 0 : i32
    %9 = arith.cmpi eq, %arg2, %c0_i32_8 : i32
    %10 = arith.extui %9 : i1 to i32
    %c0_i32_9 = arith.constant 0 : i32
    %11 = arith.cmpi ne, %10, %c0_i32_9 : i32
    scf.if %11 {
      %c0_10 = arith.constant 0 : index
      %c0_11 = arith.constant 0 : index
      %12 = vector.load %arg8[%c0_10, %c0_11] : memref<16x32xf32, #tpu.memory_space<vmem>>, vector<16x32xf32>
      %c0_12 = arith.constant 0 : index
      %c0_13 = arith.constant 0 : index
      %13 = vector.load %arg5[%c0_12, %c0_13] : memref<1x32xf32, #tpu.memory_space<vmem>>, vector<1x32xf32>
      %14 = vector.broadcast %13 : vector<1x32xf32> to vector<16x32xf32>
      %15 = arith.addf %12, %14 : vector<16x32xf32>
      %c0_14 = arith.constant 0 : index
      %c0_15 = arith.constant 0 : index
      %16 = vector.load %arg6[%c0_14, %c0_15] : memref<16x32xbf16, #tpu.memory_space<vmem>>, vector<16x32xbf16>
      %17 = arith.extf %16 : vector<16x32xbf16> to vector<16x32xf32>
      %18 = arith.addf %15, %17 : vector<16x32xf32>
      %19 = arith.truncf %18 : vector<16x32xf32> to vector<16x32xbf16>
      %c0_16 = arith.constant 0 : index
      %c0_17 = arith.constant 0 : index
      %20 = vector.load %arg7[%c0_16, %c0_17] : memref<16x32xbf16, #tpu.memory_space<vmem>>, vector<16x32xbf16>
      tpu.vector_store %arg7[%c0_16, %c0_17], %19 {strides = array<i32>} : memref<16x32xbf16, #tpu.memory_space<vmem>>, vector<16x32xbf16>,
    } else {
    }
    return
  }
  func.func @transform_0(%arg0: i32, %arg1: i32, %arg2: i32) -> (i32, i32) {
    %c0_i32 = arith.constant 0 : i32
    return %arg0, %arg2 : i32, i32
  }
  func.func @transform_1(%arg0: i32, %arg1: i32, %arg2: i32) -> (i32, i32) {
    %c0_i32 = arith.constant 0 : i32
    return %arg2, %arg1 : i32, i32
  }
  func.func @transform_2(%arg0: i32, %arg1: i32, %arg2: i32) -> (i32, i32) {
    %c0_i32 = arith.constant 0 : i32
    %c0_i32_0 = arith.constant 0 : i32
    return %c0_i32, %arg1 : i32, i32
  }
  func.func @transform_3(%arg0: i32, %arg1: i32, %arg2: i32) -> (i32, i32) {
    %c0_i32 = arith.constant 0 : i32
    return %arg0, %arg1 : i32, i32
  }
  func.func @transform_4(%arg0: i32, %arg1: i32, %arg2: i32) -> (i32, i32) {
    %c0_i32 = arith.constant 0 : i32
    return %arg0, %arg1 : i32, i32
  }
}

module attributes {stable_mosaic.version = 11 : i64} {
  func.func @_matmul_kernel(%arg0: i32, %arg1: i32, %arg2: i32, %arg3: memref<16x32xbf16, #tpu.memory_space<vmem>>, %arg4: memref<32x128xbf16, #tpu.memory_space<vmem>>, %arg5: memref<1x128xf32, #tpu.memory_space<vmem>>, %arg6: memref<16x128xbf16, #tpu.memory_space<vmem>>, %arg7: memref<16x128xf32, #tpu.memory_space<vmem>>) attributes {dimension_semantics = [#tpu.dimension_semantics<parallel>, #tpu.dimension_semantics<parallel>, #tpu.dimension_semantics<arbitrary>], iteration_bounds = array<i64: 1, 1, 1>, scalar_prefetch = 0 : i64, scratch_operands = 1 : i64, tpu.core_type = #tpu.core_type<tc>, window_params = [{transform_indices = @transform_0, window_bounds = array<i64: 16, 32>}, {transform_indices = @transform_1, window_bounds = array<i64: 32, 128>}, {transform_indices = @transform_2, window_bounds = array<i64: 1, 128>}, {transform_indices = @transform_3, window_bounds = array<i64: 16, 128>}]} {
    %c0_i32 = arith.constant 0 : i32
    %0 = arith.cmpi eq, %arg2, %c0_i32 : i32
    %1 = arith.extui %0 : i1 to i32
    %c0_i32_0 = arith.constant 0 : i32
    %2 = arith.cmpi ne, %1, %c0_i32_0 : i32
    scf.if %2 {
      %cst_10 = arith.constant 0.000000e+00 : f32
      %12 = vector.broadcast %cst_10 : f32 to vector<16x128xf32>
      %c0_11 = arith.constant 0 : index
      %c0_12 = arith.constant 0 : index
      %13 = vector.load %arg7[%c0_11, %c0_12] : memref<16x128xf32, #tpu.memory_space<vmem>>, vector<16x128xf32>
      tpu.vector_store %arg7[%c0_11, %c0_12], %12 {strides = array<i32>} : memref<16x128xf32, #tpu.memory_space<vmem>>, vector<16x128xf32>,
    } else {
    }
    %c0 = arith.constant 0 : index
    %c0_1 = arith.constant 0 : index
    %3 = vector.load %arg7[%c0, %c0_1] : memref<16x128xf32, #tpu.memory_space<vmem>>, vector<16x128xf32>
    %c0_2 = arith.constant 0 : index
    %c0_3 = arith.constant 0 : index
    %4 = vector.load %arg3[%c0_2, %c0_3] : memref<16x32xbf16, #tpu.memory_space<vmem>>, vector<16x32xbf16>
    %c0_4 = arith.constant 0 : index
    %c0_5 = arith.constant 0 : index
    %5 = vector.load %arg4[%c0_4, %c0_5] : memref<32x128xbf16, #tpu.memory_space<vmem>>, vector<32x128xbf16>
    %cst = arith.constant dense<0.000000e+00> : vector<16x128xf32>
    %6 = tpu.matmul %4, %5, %cst {dimension_numbers = #tpu.dot_dimension_numbers<[1], [0], [0], [1], [0, 0, 1, 1], [], []>} : vector<16x32xbf16>, vector<32x128xbf16>, vector<16x128xf32> -> vector<16x128xf32>
    %7 = arith.addf %3, %6 : vector<16x128xf32>
    %c0_6 = arith.constant 0 : index
    %c0_7 = arith.constant 0 : index
    %8 = vector.load %arg7[%c0_6, %c0_7] : memref<16x128xf32, #tpu.memory_space<vmem>>, vector<16x128xf32>
    tpu.vector_store %arg7[%c0_6, %c0_7], %7 {strides = array<i32>} : memref<16x128xf32, #tpu.memory_space<vmem>>, vector<16x128xf32>,
    %c0_i32_8 = arith.constant 0 : i32
    %9 = arith.cmpi eq, %arg2, %c0_i32_8 : i32
    %10 = arith.extui %9 : i1 to i32
    %c0_i32_9 = arith.constant 0 : i32
    %11 = arith.cmpi ne, %10, %c0_i32_9 : i32
    scf.if %11 {
      %c0_10 = arith.constant 0 : index
      %c0_11 = arith.constant 0 : index
      %12 = vector.load %arg7[%c0_10, %c0_11] : memref<16x128xf32, #tpu.memory_space<vmem>>, vector<16x128xf32>
      %c0_12 = arith.constant 0 : index
      %c0_13 = arith.constant 0 : index
      %13 = vector.load %arg5[%c0_12, %c0_13] : memref<1x128xf32, #tpu.memory_space<vmem>>, vector<1x128xf32>
      %14 = vector.broadcast %13 : vector<1x128xf32> to vector<16x128xf32>
      %15 = arith.addf %12, %14 : vector<16x128xf32>
      %cst_14 = arith.constant 5.000000e-01 : f32
      %16 = vector.broadcast %cst_14 : f32 to vector<16x128xf32>
      %17 = arith.mulf %16, %15 : vector<16x128xf32>
      %cst_15 = arith.constant 4.471500e-02 : f32
      %18 = vector.broadcast %cst_15 : f32 to vector<16x128xf32>
      %19 = arith.mulf %18, %15 : vector<16x128xf32>
      %20 = arith.mulf %19, %15 : vector<16x128xf32>
      %21 = arith.mulf %20, %15 : vector<16x128xf32>
      %22 = arith.addf %15, %21 : vector<16x128xf32>
      %cst_16 = arith.constant 0.797884583 : f32
      %23 = vector.broadcast %cst_16 : f32 to vector<16x128xf32>
      %24 = arith.mulf %23, %22 : vector<16x128xf32>
      %25 = math.tanh %24 : vector<16x128xf32>
      %cst_17 = arith.constant 1.000000e+00 : f32
      %26 = vector.broadcast %cst_17 : f32 to vector<16x128xf32>
      %27 = arith.addf %26, %25 : vector<16x128xf32>
      %28 = arith.mulf %17, %27 : vector<16x128xf32>
      %29 = arith.truncf %28 : vector<16x128xf32> to vector<16x128xbf16>
      %c0_18 = arith.constant 0 : index
      %c0_19 = arith.constant 0 : index
      %30 = vector.load %arg6[%c0_18, %c0_19] : memref<16x128xbf16, #tpu.memory_space<vmem>>, vector<16x128xbf16>
      tpu.vector_store %arg6[%c0_18, %c0_19], %29 {strides = array<i32>} : memref<16x128xbf16, #tpu.memory_space<vmem>>, vector<16x128xbf16>,
    } else {
    }
    return
  }
  func.func @transform_0(%arg0: i32, %arg1: i32, %arg2: i32) -> (i32, i32) {
    %c0_i32 = arith.constant 0 : i32
    return %arg0, %arg2 : i32, i32
  }
  func.func @transform_1(%arg0: i32, %arg1: i32, %arg2: i32) -> (i32, i32) {
    %c0_i32 = arith.constant 0 : i32
    return %arg2, %arg1 : i32, i32
  }
  func.func @transform_2(%arg0: i32, %arg1: i32, %arg2: i32) -> (i32, i32) {
    %c0_i32 = arith.constant 0 : i32
    %c0_i32_0 = arith.constant 0 : i32
    return %c0_i32, %arg1 : i32, i32
  }
  func.func @transform_3(%arg0: i32, %arg1: i32, %arg2: i32) -> (i32, i32) {
    %c0_i32 = arith.constant 0 : i32
    return %arg0, %arg1 : i32, i32
  }
}

module attributes {stable_mosaic.version = 11 : i64} {
  func.func @_matmul_kernel(%arg0: i32, %arg1: i32, %arg2: i32, %arg3: memref<16x32xbf16, #tpu.memory_space<vmem>>, %arg4: memref<32x64xbf16, #tpu.memory_space<vmem>>, %arg5: memref<1x64xf32, #tpu.memory_space<vmem>>, %arg6: memref<16x64xf32, #tpu.memory_space<vmem>>, %arg7: memref<16x64xf32, #tpu.memory_space<vmem>>) attributes {dimension_semantics = [#tpu.dimension_semantics<parallel>, #tpu.dimension_semantics<parallel>, #tpu.dimension_semantics<arbitrary>], iteration_bounds = array<i64: 1, 1, 1>, scalar_prefetch = 0 : i64, scratch_operands = 1 : i64, tpu.core_type = #tpu.core_type<tc>, window_params = [{transform_indices = @transform_0, window_bounds = array<i64: 16, 32>}, {transform_indices = @transform_1, window_bounds = array<i64: 32, 64>}, {transform_indices = @transform_2, window_bounds = array<i64: 1, 64>}, {transform_indices = @transform_3, window_bounds = array<i64: 16, 64>}]} {
    %c0_i32 = arith.constant 0 : i32
    %0 = arith.cmpi eq, %arg2, %c0_i32 : i32
    %1 = arith.extui %0 : i1 to i32
    %c0_i32_0 = arith.constant 0 : i32
    %2 = arith.cmpi ne, %1, %c0_i32_0 : i32
    scf.if %2 {
      %cst_10 = arith.constant 0.000000e+00 : f32
      %12 = vector.broadcast %cst_10 : f32 to vector<16x64xf32>
      %c0_11 = arith.constant 0 : index
      %c0_12 = arith.constant 0 : index
      %13 = vector.load %arg7[%c0_11, %c0_12] : memref<16x64xf32, #tpu.memory_space<vmem>>, vector<16x64xf32>
      tpu.vector_store %arg7[%c0_11, %c0_12], %12 {strides = array<i32>} : memref<16x64xf32, #tpu.memory_space<vmem>>, vector<16x64xf32>,
    } else {
    }
    %c0 = arith.constant 0 : index
    %c0_1 = arith.constant 0 : index
    %3 = vector.load %arg7[%c0, %c0_1] : memref<16x64xf32, #tpu.memory_space<vmem>>, vector<16x64xf32>
    %c0_2 = arith.constant 0 : index
    %c0_3 = arith.constant 0 : index
    %4 = vector.load %arg3[%c0_2, %c0_3] : memref<16x32xbf16, #tpu.memory_space<vmem>>, vector<16x32xbf16>
    %c0_4 = arith.constant 0 : index
    %c0_5 = arith.constant 0 : index
    %5 = vector.load %arg4[%c0_4, %c0_5] : memref<32x64xbf16, #tpu.memory_space<vmem>>, vector<32x64xbf16>
    %cst = arith.constant dense<0.000000e+00> : vector<16x64xf32>
    %6 = tpu.matmul %4, %5, %cst {dimension_numbers = #tpu.dot_dimension_numbers<[1], [0], [0], [1], [0, 0, 1, 1], [], []>} : vector<16x32xbf16>, vector<32x64xbf16>, vector<16x64xf32> -> vector<16x64xf32>
    %7 = arith.addf %3, %6 : vector<16x64xf32>
    %c0_6 = arith.constant 0 : index
    %c0_7 = arith.constant 0 : index
    %8 = vector.load %arg7[%c0_6, %c0_7] : memref<16x64xf32, #tpu.memory_space<vmem>>, vector<16x64xf32>
    tpu.vector_store %arg7[%c0_6, %c0_7], %7 {strides = array<i32>} : memref<16x64xf32, #tpu.memory_space<vmem>>, vector<16x64xf32>,
    %c0_i32_8 = arith.constant 0 : i32
    %9 = arith.cmpi eq, %arg2, %c0_i32_8 : i32
    %10 = arith.extui %9 : i1 to i32
    %c0_i32_9 = arith.constant 0 : i32
    %11 = arith.cmpi ne, %10, %c0_i32_9 : i32
    scf.if %11 {
      %c0_10 = arith.constant 0 : index
      %c0_11 = arith.constant 0 : index
      %12 = vector.load %arg7[%c0_10, %c0_11] : memref<16x64xf32, #tpu.memory_space<vmem>>, vector<16x64xf32>
      %c0_12 = arith.constant 0 : index
      %c0_13 = arith.constant 0 : index
      %13 = vector.load %arg5[%c0_12, %c0_13] : memref<1x64xf32, #tpu.memory_space<vmem>>, vector<1x64xf32>
      %14 = vector.broadcast %13 : vector<1x64xf32> to vector<16x64xf32>
      %15 = arith.addf %12, %14 : vector<16x64xf32>
      %c0_14 = arith.constant 0 : index
      %c0_15 = arith.constant 0 : index
      %16 = vector.load %arg6[%c0_14, %c0_15] : memref<16x64xf32, #tpu.memory_space<vmem>>, vector<16x64xf32>
      tpu.vector_store %arg6[%c0_14, %c0_15], %15 {strides = array<i32>} : memref<16x64xf32, #tpu.memory_space<vmem>>, vector<16x64xf32>,
    } else {
    }
    return
  }
  func.func @transform_0(%arg0: i32, %arg1: i32, %arg2: i32) -> (i32, i32) {
    %c0_i32 = arith.constant 0 : i32
    return %arg0, %arg2 : i32, i32
  }
  func.func @transform_1(%arg0: i32, %arg1: i32, %arg2: i32) -> (i32, i32) {
    %c0_i32 = arith.constant 0 : i32
    return %arg2, %arg1 : i32, i32
  }
  func.func @transform_2(%arg0: i32, %arg1: i32, %arg2: i32) -> (i32, i32) {
    %c0_i32 = arith.constant 0 : i32
    %c0_i32_0 = arith.constant 0 : i32
    return %c0_i32, %arg1 : i32, i32
  }
  func.func @transform_3(%arg0: i32, %arg1: i32, %arg2: i32) -> (i32, i32) {
    %c0_i32 = arith.constant 0 : i32
    return %arg0, %arg1 : i32, i32
  }
}

module attributes {stable_mosaic.version = 11 : i64} {
  func.func @_log_softmax_kernel(%arg0: i32, %arg1: memref<16x64xf32, #tpu.memory_space<vmem>>, %arg2: memref<16x64xf32, #tpu.memory_space<vmem>>) attributes {dimension_semantics = [#tpu.dimension_semantics<parallel>], iteration_bounds = array<i64: 1>, scalar_prefetch = 0 : i64, scratch_operands = 0 : i64, tpu.core_type = #tpu.core_type<tc>, window_params = [{transform_indices = @transform_0, window_bounds = array<i64: 16, 64>}, {transform_indices = @transform_1, window_bounds = array<i64: 16, 64>}]} {
    %c0 = arith.constant 0 : index
    %c0_0 = arith.constant 0 : index
    %0 = vector.load %arg1[%c0, %c0_0] : memref<16x64xf32, #tpu.memory_space<vmem>>, vector<16x64xf32>
    %cst = arith.constant dense<0xFF800000> : vector<16xf32>
    %1 = vector.multi_reduction <maximumf>, %0, %cst [1] : vector<16x64xf32> to vector<16xf32>
    %2 = vector.shape_cast %1 : vector<16xf32> to vector<16x1xf32>
    %3 = vector.broadcast %2 : vector<16x1xf32> to vector<16x64xf32>
    %4 = arith.subf %0, %3 : vector<16x64xf32>
    %5 = math.exp %4 : vector<16x64xf32>
    %cst_1 = arith.constant dense<0.000000e+00> : vector<16xf32>
    %6 = vector.multi_reduction <add>, %5, %cst_1 [1] : vector<16x64xf32> to vector<16xf32>
    %7 = vector.shape_cast %6 : vector<16xf32> to vector<16x1xf32>
    %8 = math.log %7 : vector<16x1xf32>
    %9 = vector.broadcast %8 : vector<16x1xf32> to vector<16x64xf32>
    %10 = arith.subf %4, %9 : vector<16x64xf32>
    %c0_2 = arith.constant 0 : index
    %c0_3 = arith.constant 0 : index
    %11 = vector.load %arg2[%c0_2, %c0_3] : memref<16x64xf32, #tpu.memory_space<vmem>>, vector<16x64xf32>
    tpu.vector_store %arg2[%c0_2, %c0_3], %10 {strides = array<i32>} : memref<16x64xf32, #tpu.memory_space<vmem>>, vector<16x64xf32>,
    return
  }
  func.func @transform_0(%arg0: i32) -> (i32, i32) {
    %c0_i32 = arith.constant 0 : i32
    %c0_i32_0 = arith.constant 0 : i32
    return %arg0, %c0_i32 : i32, i32
  }
  func.func @transform_1(%arg0: i32) -> (i32, i32) {
    %c0_i32 = arith.constant 0 : i32
    %c0_i32_0 = arith.constant 0 : i32
    return %arg0, %c0_i32 : i32, i32
  }
}

</mosaic_0001>

<bundles_post_ra>
// kernel: bertlm_forward.14
= control target key start
LH: loop header
LB: loop body
LE: loop exit
PB: predicated region body
PF: predicated region fallthrough
CT: control target
= control target key end

     0   :  { %vm19_vm0 = vcmask 785408   ;;  %v151_v0 = vmov 0.0   ;;  %vm152_vm1 = vmmov 0   ;;  %vm47_vm2 = vcmask 261120   ;;  %s195_s1 = inlined_call_operand.vmem [shape: bf16[32,96], index: 1, kind: input, shape index: {}]   ;;  %s196_s0 = inlined_call_operand.vmem [shape: bf16[16,32], index: 0, kind: input, shape index: {}]   ;;  %s197_s2 = inlined_call_operand.vmem [shape: f32[1,96], index: 2, kind: input, shape index: {}]   ;;  %s198_s3 = inlined_call_operand.vmem [shape: bf16[16,96], index: 3, kind: output, shape index: {}]  }
   0x1   :  { %138 = vmatprep.subr.bf16.mxu0 %v151_v0  ;;  %v148_v1 = vld [vmem:[%s195_s1] sm:$0xff]   ;;  %142 = vmatprep.mubr.msk.bf16.mxu0 %vm152_vm1, %v151_v0  ;;  %20 = vst.msk [vmem:[#allocation2] sm:$0xff] %vm19_vm0, %v151_v0  ;;  %21 = vst.msk [vmem:[#allocation2 + $0x8] sm:$0xff] %vm19_vm0, %v151_v0  ;;  %v149_v2 = vld [vmem:[%s195_s1 + $0x8] sm:$0xff]   ;;  %vm119_vm3 = vcmask 781312  }
   0x2   :  { %139 = vmatpush3.bf16.msra.mxu0 %v148_v1  ;;  %v150_v3 = vld [vmem:[%s196_s0] sm:$0xff]  }
   0x3   :  { %140 = vmatprep.subr.bf16.mxu0 %v151_v0  ;;  %v130_v12 = vld [vmem:[%s197_s2] ss:$0 sm:$0xff] }
   0x6   :  { %141 = vmatpush3.bf16.msra.mxu0 %v149_v2 }
   0x8   :  { %v22_v4 = vld [vmem:[#allocation2] sm:$0xff]  ;;  %v23_v6 = vld [vmem:[#allocation2 + $0x8] sm:$0xff] }
   0x9   :  { %143 = vmatmul.mubr.msk.bf16.vlgmr.msra.gmra.mrb[0].mxu0 %vm47_vm2, %v150_v3 }
  0xdc   :  { %v85_v5 = vpop.f32.mrb[0].mxu0 }
  0xdd   :  { %v92_v7 = vadd.f32 %v85_v5, %v22_v4  ;;  %v144_v8 = vpop.f32.mrb[1].mxu0 }
  0xde   :  { %v88_v9 = vpop.f32.mrb[2].mxu0 }
  0xdf   :  { %95 = vst.msk [vmem:[#allocation2] sm:$0xff] %vm19_vm0, %v92_v7  ;;  %v93_v10 = vadd.f32 %v88_v9, %v23_v6  ;;  %v145_v11 = vpop.f32.mrb[3].mxu0 }
  0xe1   :  { %96 = vst.msk [vmem:[#allocation2 + $0x8] sm:$0xff] %vm19_vm0, %v93_v10 }
  0xe6   :  { %v100_v13 = vld [vmem:[#allocation2] sm:$0xff] }
  0xe7   :  { %v109_v14 = vadd.f32 %v130_v12, %v100_v13 }
  0xe8   :  { %v101_v15 = vld [vmem:[#allocation2 + $0x8] sm:$0xff] }
  0xe9   :  { %v133_v16 = vpack.c.bf16 %v109_v14, %v109_v14  ;;  %v110_v17 = vadd.f32 %v130_v12, %v101_v15 }
  0xeb   :  { %120 = vst.msk [vmem:[%s198_s3] sm:$0xf] %vm119_vm3, %v133_v16  ;;  %v134_v18 = vpack.c.bf16 %v110_v17, %v110_v17 }
  0xed   :  { %121 = vst.msk [vmem:[%s198_s3 + $0x4] sm:$0xf] %vm119_vm3, %v134_v18 }

// kernel: bertlm_forward.13
= control target key start
LH: loop header
LB: loop body
LE: loop exit
PB: predicated region body
PF: predicated region fallthrough
CT: control target
= control target key end

     0   :  { %vm18_vm0 = vcmask 261120   ;;  %vm72_vm1 = vcmask 257024   ;;  %s132_s0 = inlined_call_operand.vmem [shape: bf16[16,32], index: 0, kind: input, shape index: {}]   ;;  %s133_s1 = inlined_call_operand.vmem [shape: f32[1,32], index: 1, kind: input, shape index: {}]   ;;  %s134_s2 = inlined_call_operand.vmem [shape: f32[1,32], index: 2, kind: input, shape index: {}]   ;;  %s135_s3 = inlined_call_operand.vmem [shape: bf16[16,32], index: 3, kind: output, shape index: {}]  }
   0x1   :  { %v86_v0 = vld [vmem:[%s132_s0] sm:$0xff]  }
   0x2   :  { %v87_v1 = vunpack.c.l.bf16 %v86_v0  ;;  %v88_v2 = vunpack.c.h.bf16 %v86_v0  ;;  %v79_v22 = vld [vmem:[%s133_s1] ss:$0 sm:$0xff] }
   0x3   :  { %v80_v24 = vld [vmem:[%s134_s2] ss:$0 sm:$0xff] }
   0x4   :  { %v19_v3 = vsel %vm18_vm0, %v87_v1, 0.0  ;;  %v22_v4 = vsel %vm18_vm0, %v88_v2, 0.0 }
   0x5   :  { %20 = vadd.xlane.f32.xlu0 %v19_v3 }
   0x9   :  { %23 = vadd.xlane.f32.xlu0 %v22_v4 }
  0x92   :  { %v21_v5 = vpop.xlane.xlu0 %20 }
  0x93   :  { %v26_v6 = vmul.f32 0.03125, %v21_v5 }
  0x95   :  { %v28_v7 = vsub.f32 %v87_v1, %v26_v6 }
  0x96   :  { %v24_v8 = vpop.xlane.xlu0 %23 }
  0x97   :  { %v27_v9 = vmul.f32 0.03125, %v24_v8  ;;  %v30_v10 = vmul.f32 %v28_v7, %v28_v7 }
  0x99   :  { %v29_v11 = vsub.f32 %v88_v2, %v27_v9  ;;  %v32_v12 = vsel %vm18_vm0, %v30_v10, 0.0 }
  0x9a   :  { %33 = vadd.xlane.f32.xlu1 %v32_v12 }
  0x9b   :  { %v31_v13 = vmul.f32 %v29_v11, %v29_v11 }
  0x9d   :  { %v35_v14 = vsel %vm18_vm0, %v31_v13, 0.0 }
  0x9e   :  { %36 = vadd.xlane.f32.xlu1 %v35_v14 }
 0x127   :  { %v34_v15 = vpop.xlane.xlu1 %33 }
 0x128   :  { %v38_v16 = vmul.f32 0.03125, %v34_v15 }
 0x12a   :  { %v40_v17 = vadd.f32 1e-06, %v38_v16 }
 0x12b   :  { %v37_v18 = vpop.xlane.xlu1 %36 }
 0x12c   :  { %89 = vrsqrt.f32 %v40_v17  ;;  %v39_v19 = vmul.f32 0.03125, %v37_v18 }
 0x12e   :  { %v41_v20 = vadd.f32 1e-06, %v39_v19 }
 0x130   :  { %91 = vrsqrt.f32 %v41_v20 }
 0x136   :  { %v90_v21 = vpop.eup %89 }
 0x137   :  { %v44_v23 = vmul.f32 %v90_v21, %v28_v7 }
 0x139   :  { %v53_v25 = vmul.f32 %v79_v22, %v44_v23 }
 0x13a   :  { %v92_v26 = vpop.eup %91 }
 0x13b   :  { %v62_v27 = vadd.f32 %v80_v24, %v53_v25  ;;  %v45_v28 = vmul.f32 %v92_v26, %v29_v11 }
 0x13d   :  { %v83_v29 = vpack.c.bf16 %v62_v27, %v62_v27  ;;  %v54_v30 = vmul.f32 %v79_v22, %v45_v28 }
 0x13f   :  { %73 = vst.msk [vmem:[%s135_s3] sm:$0xf] %vm72_vm1, %v83_v29  ;;  %v63_v31 = vadd.f32 %v80_v24, %v54_v30 }
 0x141   :  { %v84_v32 = vpack.c.bf16 %v63_v31, %v63_v31 }
 0x143   :  { %74 = vst.msk [vmem:[%s135_s3 + $0x4] sm:$0xf] %vm72_vm1, %v84_v32 }

// kernel: bertlm_forward.15
= control target key start
LH: loop header
LB: loop body
LE: loop exit
PB: predicated region body
PF: predicated region fallthrough
CT: control target
= control target key end

     0   :  { %s577_s9 = smov 0   ;;  %s639_s0 = inlined_call_operand.vmem [shape: bf16[2,8,96], index: 0, kind: input, shape index: {}]   ;;  %s640_s1 = inlined_call_operand.vmem [shape: f32[2,1,8], index: 1, kind: input, shape index: {}]   ;;  %s641_s2 = inlined_call_operand.vmem [shape: bf16[2,8,32], index: 2, kind: output, shape index: {}]  }
   0x1 LB: > { %s469_s10 = sadd.s32 4294967295, %s551_s9   ;;  %p473_p0 = scmp.ge.s32.totalorder %s551_s9, 1  ;;  %s551_s9 = sphi %s577_s9, %s12_s9  }
   0x2   : > { %p119_p1 = scmp.lt.s32.totalorder %s551_s9, 3 }
   0x4   : > { %p120_p2 = pnand %p473_p0, %p119_p1 }
   0x5   : > { %p142_p3 = scmp.lt.s32.totalorder (!%p120_p2), %s469_s10, 1  ;;  %v553_v0 = vmov (!%p120_p2), 0.0   ;;  %vm554_vm0 = vmmov (!%p120_p2), 0   ;;  %s555_s15 = smov (!%p120_p2), 96   ;;  %vm161_vm1 = vcmask (!%p120_p2), 130048   ;;  %v211_v5 = vlaneseq (!%p120_p2) }
   0x6   : > { %123 = sbr.rel (%p120_p2) target bundleno = 1542 (0x606), region = 28  ;;  %494 = vmatprep.subr.bf16.mxu0 (!%p120_p2), %v553_v0  ;;  %496 = vmatprep.mubr.msk.bf16.mxu0 (!%p120_p2), %vm554_vm0, %v553_v0  ;;  %s556_s16 = smov (!%p120_p2), 64   ;;  %v557_v9 = vmov (!%p120_p2), 0   ;;  %vm217_vm4 = vcmask (!%p120_p2), 64512   ;;  %vm235_vm5 = vcmask (!%p120_p2), 1043456   ;;  %vm280_vm6 = vcmask (!%p120_p2), 125952  }
   0x7   : > { %500 = vmatprep.subr.bf16.mxu1 (!%p120_p2), %v553_v0  ;;  %502 = vmatprep.mubr.msk.bf16.mxu1 (!%p120_p2), %vm554_vm0, %v553_v0  ;;  %v212_v7 = vshrl.u32 (!%p120_p2), %v211_v5, 7  ;;  %s558_s20 = smov (!%p120_p2), 80   ;;  %s559_s21 = smov (!%p120_p2), 112   ;;  %vm405_vm7 = vcmask (!%p120_p2), 257152  }
   0x8   : > { %s560_s25 = smov (!%p120_p2), 48   ;;  %s561_s26 = smov (!%p120_p2), 16  }
   0x9   : > { %v213_v8 = vsub.s32 (!%p120_p2), 0, %v212_v7 }
   0xd   : > { %s643_s10 = smov (!%p142_p3, %s469_s10), 1 }
   0xe   : > { %s474_s11 = sshll.u32 %s643_s10, 2  ;;  %s148_s19 = scalar_lea.vmem %s640_s1, %s643_s10 }
   0xf   : > { %s599_s14 = scalar_lea.vmem %s639_s0, %s474_s11  ;;  %v154_v6 = vld [vmem:[%s148_s19] sm:$0x1]  ;;  %s627_s24 = scalar_lea.vmem %s641_s2, %s474_s11 }
  0x10   : > { %v155_v1 = vld [vmem:[%s599_s14] sm:$0xf]  ;;  %vm209_vm2 = vcmp.gt.f32.partialorder %v154_v6, 0.0 }
  0x11   : > { %v476_v2 = vcombine.low %v155_v1, %v155_v1  ;;  %v210_v10 = vsel %vm209_vm2, 1, %v557_v9  ;;  %v536_v26 = vld [vmem:[%s599_s14] ss:$0 sps:$4 sm:$0xff]  }
  0x12   : > { %v214_v11 = vrot.slane %v210_v10, %v213_v8 }
  0x13   : > { %159 = vrot.lane.b32.xlu0 %v476_v2, %s555_s15  ;;  %230 = vrot.lane.b32.xlu1 %v476_v2, %s556_s16 }
  0x14   : > { %vm215_vm3 = vcmp.eq.s32.totalorder %v214_v11, 1 }
  0x85   : > { %v160_v3 = vpop.permute.xlu0 %159  ;;  %v231_v19 = vpop.permute.xlu1 %230 }
  0x86   : > { %v166_v4 = vsel %vm161_vm1, %v160_v3, 0  ;;  %v237_v20 = vsel %vm235_vm5, %v231_v19, 0 }
  0x87   : > { %495 = vmatpush3.bf16.xpose.msra.mxu0 %v166_v4  ;;  %501 = vmatpush3.bf16.msra.mxu1 %v237_v20 }
  0x88   : > { %512 = vmatprep.subr.bf16.mxu0 %v553_v0  ;;  %506 = vmatprep.subr.bf16.mxu1 %v553_v0 }
  0x8e   : > { %497 = vmatmul.mubr.msk.bf16.vlgmr.msra.gmra.mrb[0].mxu0 %vm161_vm1, %v155_v1 }
  0x8f   : > { %514 = vmatprep.mubr.msk.bf16.mxu0 %vm554_vm0, %v553_v0 }
 0x161   : > { %v202_v12 = vpop.f32.mrb[0].mxu0 }
 0x162   : > { %v208_v13 = vmul.f32 0.25, %v202_v12  ;;  %v498_v14 = vpop.f32.mrb[1].mxu0 }
 0x163   : > { %v205_v15 = vpop.f32.mrb[2].mxu0 }
 0x164   : > { %v499_v16 = vpop.f32.mrb[3].mxu0  ;;  %v216_v17 = vsel %vm215_vm3, %v208_v13, -1e+09 }
 0x165   : > { %v218_v18 = vsel %vm217_vm4, %v216_v17, -inf }
 0x166   : > { %219 = vmax.xlane.f32.xlu0 %v218_v18 }
 0x1f3   : > { %v220_v21 = vpop.xlane.xlu0 %219 }
 0x1f4   : > { %v221_v22 = vsub.f32 %v216_v17, %v220_v21 }
 0x1f6   : > { %v222_v23 = vmul.f32 1.442695, %v221_v22 }
 0x1f8   : > { %537 = vpow2.f32 %v222_v23 }
 0x202   : > { %v538_v24 = vpop.eup %537 }
 0x203   : > { %v224_v25 = vsel %vm217_vm4, %v538_v24, 0.0 }
 0x204   : > { %225 = vadd.xlane.f32.xlu1 %v224_v25 }
 0x215   : > { %288 = vrot.lane.b32.xlu1 %v536_v26, %s558_s20 }
 0x219   : > { %286 = vrot.lane.b32.xlu1 %v536_v26, %s559_s21 }
 0x291   : > { %v226_v27 = vpop.xlane.xlu1 %225 }
 0x292   : > { %539 = vrcp.f32 %v226_v27 }
 0x295   : > { %v289_v29 = vpop.permute.xlu1 %288 }
 0x296   : > { %v294_v31 = vsel %vm161_vm1, %v289_v29, 0 }
 0x299   : > { %v287_v33 = vpop.permute.xlu1 %286 }
 0x29c   : > { %v540_v28 = vpop.eup %539 }
 0x29d   : > { %v228_v30 = vmul.f32 %v540_v28, %v538_v24 }
 0x29f   : > { %v229_v32 = vpack.c.bf16 %v228_v30, %v228_v30 }
 0x2a1   : > { %503 = vmatmul.mubr.msk.bf16.vlgmr.msra.gmra.mrb[0].mxu1 %vm217_vm4, %v229_v32 }
 0x2a2   : > { %507 = vmatpush3.bf16.xpose.msra.mxu1 %v294_v31  ;;  %508 = vmatprep.mubr.msk.bf16.mxu1 %vm554_vm0, %v553_v0 }
 0x2a9   : > { %509 = vmatmul.mubr.msk.bf16.vlgmr.msra.gmra.mrb[4].mxu1 %vm161_vm1, %v287_v33 }
 0x374   : > { %v273_v34 = vpop.f32.mrb[0].mxu1 }
 0x375   : > { %v279_v35 = vpack.c.bf16 %v273_v34, %v273_v34  ;;  %v504_v36 = vpop.f32.mrb[1].mxu1 }
 0x376   : > { %v276_v37 = vpop.f32.mrb[2].mxu1 }
 0x377   : > { %281 = vst.msk [vmem:[%s627_s24] sm:$0xf] %vm280_vm6, %v279_v35  ;;  %v505_v38 = vpop.f32.mrb[3].mxu1 }
 0x37c   : > { %v330_v39 = vpop.f32.mrb[4].mxu1 }
 0x37d   : > { %v336_v40 = vmul.f32 0.25, %v330_v39  ;;  %v510_v41 = vpop.f32.mrb[5].mxu1 }
 0x37e   : > { %v333_v42 = vpop.f32.mrb[6].mxu1 }
 0x37f   : > { %v511_v43 = vpop.f32.mrb[7].mxu1  ;;  %v337_v44 = vsel %vm215_vm3, %v336_v40, -1e+09 }
 0x380   : > { %v338_v45 = vsel %vm217_vm4, %v337_v44, -inf }
 0x381   : > { %339 = vmax.xlane.f32.xlu1 %v338_v45 }
 0x40e   : > { %v340_v46 = vpop.xlane.xlu1 %339 }
 0x40f   : > { %v341_v47 = vsub.f32 %v337_v44, %v340_v46 }
 0x411   : > { %v342_v48 = vmul.f32 1.442695, %v341_v47 }
 0x413   : > { %541 = vpow2.f32 %v342_v48 }
 0x41d   : > { %v542_v49 = vpop.eup %541 }
 0x41e   : > { %v344_v50 = vsel %vm217_vm4, %v542_v49, 0.0 }
 0x41f   : > { %345 = vadd.xlane.f32.xlu0 %v344_v50 }
 0x435   : > { %350 = vrot.lane.b32.xlu0 %v536_v26, %s560_s25 }
 0x4ac   : > { %v346_v51 = vpop.xlane.xlu0 %345 }
 0x4ad   : > { %543 = vrcp.f32 %v346_v51 }
 0x4b0   : > { %v351_v52 = vpop.permute.xlu0 %350 }
 0x4b1   : > { %v356_v53 = vsel %vm235_vm5, %v351_v52, 0 }
 0x4b2   : > { %513 = vmatpush3.bf16.msra.mxu0 %v356_v53 }
 0x4b7   : > { %v544_v54 = vpop.eup %543 }
 0x4b8   : > { %v348_v55 = vmul.f32 %v544_v54, %v542_v49 }
 0x4ba   : > { %v349_v56 = vpack.c.bf16 %v348_v55, %v348_v55 }
 0x4bc   : > { %515 = vmatmul.mubr.msk.bf16.vlgmr.msra.gmra.mrb[4].mxu0 %vm217_vm4, %v349_v56 }
 0x58f   : > { %v392_v57 = vpop.f32.mrb[4].mxu0 }
 0x590   : > { %v485_v58 = vpack.c.bf16 %v392_v57, %v392_v57  ;;  %v516_v59 = vpop.f32.mrb[5].mxu0 }
 0x591   : > { %v395_v60 = vpop.f32.mrb[6].mxu0 }
 0x592   : > { %402 = vrot.lane.b32.xlu0 %v485_v58, %s561_s26  ;;  %v517_v61 = vpop.f32.mrb[7].mxu0 }
 0x604   : > { %v403_v62 = vpop.permute.xlu0 %402 }
 0x605   : > { %406 = vst.msk [vmem:[%s627_s24] sm:$0xf] %vm405_vm7, %v403_v62 }
 0x606 PF: > { %s12_s9 = sadd.s32 1, %s551_s9  }
 0x607   : > { %p9_p4 = scmp.ge.s32.totalorder %s12_s9, 4  }
 0x609   :  { %11 = sbr.rel (!%p9_p4) target bundleno = 1 (0x1), region = 61 }

// kernel: bertlm_forward.16
= control target key start
LH: loop header
LB: loop body
LE: loop exit
PB: predicated region body
PF: predicated region fallthrough
CT: control target
= control target key end

     0   :  { %vm30_vm0 = vcmask 261120   ;;  %v240_v0 = vmov 0.0   ;;  %vm241_vm1 = vmmov 0   ;;  %vm135_vm2 = vcmask 257024   ;;  %s328_s1 = inlined_call_operand.vmem [shape: bf16[32,32], index: 1, kind: input, shape index: {}]   ;;  %s329_s0 = inlined_call_operand.vmem [shape: bf16[16,32], index: 0, kind: input, shape index: {}]   ;;  %s330_s3 = inlined_call_operand.vmem [shape: bf16[16,32], index: 3, kind: input, shape index: {}]   ;;  %s331_s2 = inlined_call_operand.vmem [shape: f32[1,32], index: 2, kind: input, shape index: {}]   ;;  %s332_s6 = inlined_call_operand.vmem [shape: bf16[16,32], index: 6, kind: output, shape index: {0}]   ;;  %s333_s4 = inlined_call_operand.vmem [shape: f32[1,32], index: 4, kind: input, shape index: {}]   ;;  %s334_s5 = inlined_call_operand.vmem [shape: f32[1,32], index: 5, kind: input, shape index: {}]   ;;  %s335_s7 = inlined_call_operand.vmem [shape: bf16[16,32], index: 7, kind: output, shape index: {1}]  }
   0x1   :  { %223 = vmatprep.subr.bf16.mxu0 %v240_v0  ;;  %v233_v1 = vld [vmem:[%s328_s1] sm:$0xff]   ;;  %227 = vmatprep.mubr.msk.bf16.mxu0 %vm241_vm1, %v240_v0  ;;  %31 = vst.msk [vmem:[#allocation2] sm:$0xff] %vm30_vm0, %v240_v0  ;;  %32 = vst.msk [vmem:[#allocation2 + $0x8] sm:$0xff] %vm30_vm0, %v240_v0  ;;  %v234_v2 = vld [vmem:[%s328_s1 + $0x8] sm:$0xff]  }
   0x2   :  { %224 = vmatpush3.bf16.msra.mxu0 %v233_v1  ;;  %v235_v3 = vld [vmem:[%s329_s0] sm:$0xff]  }
   0x3   :  { %225 = vmatprep.subr.bf16.mxu0 %v240_v0  ;;  %v217_v12 = vld [vmem:[%s330_s3] sm:$0xff]  }
   0x4   :  { %v205_v13 = vld [vmem:[%s331_s2] ss:$0 sm:$0xff]  ;;  %v218_v14 = vunpack.c.l.bf16 %v217_v12  ;;  %v219_v17 = vunpack.c.h.bf16 %v217_v12 }
   0x5   :  { %v208_v43 = vld [vmem:[%s333_s4] ss:$0 sm:$0xff] }
   0x6   :  { %226 = vmatpush3.bf16.msra.mxu0 %v234_v2  ;;  %v209_v45 = vld [vmem:[%s334_s5] ss:$0 sm:$0xff] }
   0x8   :  { %v33_v4 = vld [vmem:[#allocation2] sm:$0xff]  ;;  %v34_v6 = vld [vmem:[#allocation2 + $0x8] sm:$0xff] }
   0x9   :  { %228 = vmatmul.mubr.msk.bf16.vlgmr.msra.gmra.mrb[0].mxu0 %vm30_vm0, %v235_v3 }
  0xdc   :  { %v96_v5 = vpop.f32.mrb[0].mxu0 }
  0xdd   :  { %v103_v7 = vadd.f32 %v96_v5, %v33_v4  ;;  %v229_v8 = vpop.f32.mrb[1].mxu0 }
  0xde   :  { %v99_v9 = vpop.f32.mrb[2].mxu0 }
  0xdf   :  { %105 = vst.msk [vmem:[#allocation2] sm:$0xff] %vm30_vm0, %v103_v7  ;;  %v104_v10 = vadd.f32 %v99_v9, %v34_v6  ;;  %v230_v11 = vpop.f32.mrb[3].mxu0 }
  0xe1   :  { %106 = vst.msk [vmem:[#allocation2 + $0x8] sm:$0xff] %vm30_vm0, %v104_v10 }
  0xe6   :  { %v110_v15 = vld [vmem:[#allocation2] sm:$0xff] }
  0xe7   :  { %v119_v16 = vadd.f32 %v205_v13, %v110_v15 }
  0xe8   :  { %v111_v18 = vld [vmem:[#allocation2 + $0x8] sm:$0xff] }
  0xe9   :  { %v125_v19 = vadd.f32 %v218_v14, %v119_v16  ;;  %v120_v20 = vadd.f32 %v205_v13, %v111_v18 }
  0xeb   :  { %v138_v21 = vsel %vm30_vm0, %v125_v19, 0.0  ;;  %v212_v22 = vpack.c.bf16 %v125_v19, %v125_v19  ;;  %v126_v23 = vadd.f32 %v219_v17, %v120_v20 }
  0xec   :  { %139 = vadd.xlane.f32.xlu0 %v138_v21 }
  0xed   :  { %136 = vst.msk [vmem:[%s332_s6] sm:$0xf] %vm135_vm2, %v212_v22  ;;  %v213_v24 = vpack.c.bf16 %v126_v23, %v126_v23  ;;  %v141_v25 = vsel %vm30_vm0, %v126_v23, 0.0 }
  0xef   :  { %137 = vst.msk [vmem:[%s332_s6 + $0x4] sm:$0xf] %vm135_vm2, %v213_v24 }
  0xf0   :  { %142 = vadd.xlane.f32.xlu0 %v141_v25 }
 0x179   :  { %v140_v26 = vpop.xlane.xlu0 %139 }
 0x17a   :  { %v145_v27 = vmul.f32 0.03125, %v140_v26 }
 0x17c   :  { %v147_v28 = vsub.f32 %v125_v19, %v145_v27 }
 0x17d   :  { %v143_v29 = vpop.xlane.xlu0 %142 }
 0x17e   :  { %v146_v30 = vmul.f32 0.03125, %v143_v29  ;;  %v149_v31 = vmul.f32 %v147_v28, %v147_v28 }
 0x180   :  { %v148_v32 = vsub.f32 %v126_v23, %v146_v30  ;;  %v151_v33 = vsel %vm30_vm0, %v149_v31, 0.0 }
 0x181   :  { %152 = vadd.xlane.f32.xlu1 %v151_v33 }
 0x182   :  { %v150_v34 = vmul.f32 %v148_v32, %v148_v32 }
 0x184   :  { %v154_v35 = vsel %vm30_vm0, %v150_v34, 0.0 }
 0x185   :  { %155 = vadd.xlane.f32.xlu1 %v154_v35 }
 0x20e   :  { %v153_v36 = vpop.xlane.xlu1 %152 }
 0x20f   :  { %v157_v37 = vmul.f32 0.03125, %v153_v36 }
 0x211   :  { %v159_v38 = vadd.f32 1e-06, %v157_v37 }
 0x212   :  { %v156_v39 = vpop.xlane.xlu1 %155 }
 0x213   :  { %236 = vrsqrt.f32 %v159_v38  ;;  %v158_v40 = vmul.f32 0.03125, %v156_v39 }
 0x215   :  { %v160_v41 = vadd.f32 1e-06, %v158_v40 }
 0x217   :  { %238 = vrsqrt.f32 %v160_v41 }
 0x21d   :  { %v237_v42 = vpop.eup %236 }
 0x21e   :  { %v163_v44 = vmul.f32 %v237_v42, %v147_v28 }
 0x220   :  { %v172_v46 = vmul.f32 %v208_v43, %v163_v44 }
 0x221   :  { %v239_v47 = vpop.eup %238 }
 0x222   :  { %v181_v48 = vadd.f32 %v209_v45, %v172_v46  ;;  %v164_v49 = vmul.f32 %v239_v47, %v148_v32 }
 0x224   :  { %v214_v50 = vpack.c.bf16 %v181_v48, %v181_v48  ;;  %v173_v51 = vmul.f32 %v208_v43, %v164_v49 }
 0x226   :  { %191 = vst.msk [vmem:[%s335_s7] sm:$0xf] %vm135_vm2, %v214_v50  ;;  %v182_v52 = vadd.f32 %v209_v45, %v173_v51 }
 0x228   :  { %v215_v53 = vpack.c.bf16 %v182_v52, %v182_v52 }
 0x22a   :  { %192 = vst.msk [vmem:[%s335_s7 + $0x4] sm:$0xf] %vm135_vm2, %v215_v53 }

// kernel: bertlm_forward.23
= control target key start
LH: loop header
LB: loop body
LE: loop exit
PB: predicated region body
PF: predicated region fallthrough
CT: control target
= control target key end

     0   :  { %vm22_vm0 = vcmask 261120   ;;  %v238_v0 = vmov 0.0   ;;  %vm239_vm1 = vmmov 0   ;;  %vm173_vm2 = vcmask 257024   ;;  %s308_s1 = inlined_call_operand.vmem [shape: bf16[128,32], index: 1, kind: input, shape index: {}]   ;;  %s309_s0 = inlined_call_operand.vmem [shape: bf16[16,128], index: 0, kind: input, shape index: {}]   ;;  %s310_s3 = inlined_call_operand.vmem [shape: bf16[16,32], index: 3, kind: input, shape index: {}]   ;;  %s311_s2 = inlined_call_operand.vmem [shape: f32[1,32], index: 2, kind: input, shape index: {}]   ;;  %s312_s4 = inlined_call_operand.vmem [shape: bf16[16,32], index: 4, kind: output, shape index: {}]  }
   0x1   :  { %207 = vmatprep.subr.bf16.mxu0 %v238_v0  ;;  %v229_v1 = vld [vmem:[%s308_s1] sm:$0xff]   ;;  %223 = vmatprep.mubr.msk.bf16.mxu0 %vm239_vm1, %v238_v0  ;;  %23 = vst.msk [vmem:[#allocation2] sm:$0xff] %vm22_vm0, %v238_v0  ;;  %24 = vst.msk [vmem:[#allocation2 + $0x8] sm:$0xff] %vm22_vm0, %v238_v0  ;;  %v230_v2 = vld [vmem:[%s308_s1 + $0x8] sm:$0xff]  }
   0x2   :  { %208 = vmatpush3.bf16.msra.mxu0 %v229_v1  ;;  %v231_v3 = vld [vmem:[%s308_s1 + $0x10] sm:$0xff]   ;;  %v232_v4 = vld [vmem:[%s308_s1 + $0x18] sm:$0xff]   ;;  %v233_v5 = vld [vmem:[%s308_s1 + $0x20] sm:$0xff]  }
   0x3   :  { %209 = vmatprep.subr.bf16.mxu0 %v238_v0  ;;  %v234_v6 = vld [vmem:[%s308_s1 + $0x28] sm:$0xff]   ;;  %v235_v7 = vld [vmem:[%s308_s1 + $0x30] sm:$0xff]   ;;  %v236_v8 = vld [vmem:[%s308_s1 + $0x38] sm:$0xff]  }
   0x4   :  { %v237_v9 = vld [vmem:[%s309_s0] sm:$0xff]  }
   0x5   :  { %v195_v18 = vld [vmem:[%s310_s3] sm:$0xff]  }
   0x6   :  { %210 = vmatpush3.bf16.msra.mxu0 %v230_v2  ;;  %v189_v19 = vld [vmem:[%s311_s2] ss:$0 sm:$0xff]  ;;  %v196_v20 = vunpack.c.l.bf16 %v195_v18  ;;  %v197_v23 = vunpack.c.h.bf16 %v195_v18 }
   0x7   :  { %211 = vmatprep.subr.bf16.mxu0 %v238_v0 }
   0x8   :  { %v25_v10 = vld [vmem:[#allocation2] sm:$0xff]  ;;  %v26_v12 = vld [vmem:[#allocation2 + $0x8] sm:$0xff] }
   0xa   :  { %212 = vmatpush3.bf16.msra.mxu0 %v231_v3 }
   0xb   :  { %213 = vmatprep.subr.bf16.mxu0 %v238_v0 }
   0xe   :  { %214 = vmatpush3.bf16.msra.mxu0 %v232_v4 }
   0xf   :  { %215 = vmatprep.subr.bf16.mxu0 %v238_v0 }
  0x12   :  { %216 = vmatpush3.bf16.msra.mxu0 %v233_v5 }
  0x13   :  { %217 = vmatprep.subr.bf16.mxu0 %v238_v0 }
  0x16   :  { %218 = vmatpush3.bf16.msra.mxu0 %v234_v6 }
  0x17   :  { %219 = vmatprep.subr.bf16.mxu0 %v238_v0 }
  0x1a   :  { %220 = vmatpush3.bf16.msra.mxu0 %v235_v7 }
  0x1b   :  { %221 = vmatprep.subr.bf16.mxu0 %v238_v0 }
  0x1e   :  { %222 = vmatpush3.bf16.msra.mxu0 %v236_v8 }
  0x21   :  { %224 = vmatmul.mubr.bf16.vlgmr.msra.gmra.mrb[0].mxu0 %v237_v9 }
  0xf4   :  { %v133_v11 = vpop.f32.mrb[0].mxu0 }
  0xf5   :  { %v140_v13 = vadd.f32 %v133_v11, %v25_v10  ;;  %v225_v14 = vpop.f32.mrb[1].mxu0 }
  0xf6   :  { %v136_v15 = vpop.f32.mrb[2].mxu0 }
  0xf7   :  { %143 = vst.msk [vmem:[#allocation2] sm:$0xff] %vm22_vm0, %v140_v13  ;;  %v141_v16 = vadd.f32 %v136_v15, %v26_v12  ;;  %v226_v17 = vpop.f32.mrb[3].mxu0 }
  0xf9   :  { %144 = vst.msk [vmem:[#allocation2 + $0x8] sm:$0xff] %vm22_vm0, %v141_v16 }
  0xfe   :  { %v148_v21 = vld [vmem:[#allocation2] sm:$0xff] }
  0xff   :  { %v157_v22 = vadd.f32 %v189_v19, %v148_v21 }
 0x100   :  { %v149_v24 = vld [vmem:[#allocation2 + $0x8] sm:$0xff] }
 0x101   :  { %v163_v25 = vadd.f32 %v196_v20, %v157_v22  ;;  %v158_v26 = vadd.f32 %v189_v19, %v149_v24 }
 0x103   :  { %v192_v27 = vpack.c.bf16 %v163_v25, %v163_v25  ;;  %v164_v28 = vadd.f32 %v197_v23, %v158_v26 }
 0x105   :  { %174 = vst.msk [vmem:[%s312_s4] sm:$0xf] %vm173_vm2, %v192_v27  ;;  %v193_v29 = vpack.c.bf16 %v164_v28, %v164_v28 }
 0x107   :  { %175 = vst.msk [vmem:[%s312_s4 + $0x4] sm:$0xf] %vm173_vm2, %v193_v29 }

// kernel: bertlm_forward.17
= control target key start
LH: loop header
LB: loop body
LE: loop exit
PB: predicated region body
PF: predicated region fallthrough
CT: control target
= control target key end

     0   :  { %v175_v0 = vmov 0.0   ;;  %vm176_vm0 = vmmov 0   ;;  %vm46_vm1 = vcmask 261120   ;;  %s212_s1 = inlined_call_operand.vmem [shape: bf16[32,128], index: 1, kind: input, shape index: {}]   ;;  %s213_s0 = inlined_call_operand.vmem [shape: bf16[16,32], index: 0, kind: input, shape index: {}]   ;;  %s214_s2 = inlined_call_operand.vmem [shape: f32[1,128], index: 2, kind: input, shape index: {}]   ;;  %s215_s3 = inlined_call_operand.vmem [shape: bf16[16,128], index: 3, kind: output, shape index: {}]  }
   0x1   :  { %158 = vmatprep.subr.bf16.mxu0 %v175_v0  ;;  %v168_v1 = vld [vmem:[%s212_s1] sm:$0xff]   ;;  %162 = vmatprep.mubr.msk.bf16.mxu0 %vm176_vm0, %v175_v0  ;;  %v169_v2 = vld [vmem:[%s212_s1 + $0x8] sm:$0xff]  }
   0x2   :  { %159 = vmatpush3.bf16.msra.mxu0 %v168_v1  ;;  %v170_v3 = vld [vmem:[%s213_s0] sm:$0xff]  }
   0x3   :  { %160 = vmatprep.subr.bf16.mxu0 %v175_v0  ;;  %v145_v4 = vld [vmem:[%s214_s2] ss:$0 sm:$0xff] }
   0x6   :  { %161 = vmatpush3.bf16.msra.mxu0 %v169_v2 }
   0x9   :  { %163 = vmatmul.mubr.msk.bf16.vlgmr.msra.gmra.mrb[0].mxu0 %vm46_vm1, %v170_v3 }
  0xdc   :  { %v84_v5 = vpop.f32.mrb[0].mxu0 }
  0xdd   :  { %v107_v6 = vadd.f32 %v145_v4, %v84_v5  ;;  %v164_v7 = vpop.f32.mrb[1].mxu0 }
  0xde   :  { %v87_v8 = vpop.f32.mrb[2].mxu0 }
  0xdf   :  { %v111_v9 = vmul.f32 0.044715, %v107_v6  ;;  %v108_v10 = vadd.f32 %v145_v4, %v87_v8  ;;  %v165_v11 = vpop.f32.mrb[3].mxu0  ;;  %v109_v24 = vmul.f32 0.5, %v107_v6 }
  0xe1   :  { %v113_v12 = vmul.f32 %v111_v9, %v107_v6  ;;  %v112_v13 = vmul.f32 0.044715, %v108_v10  ;;  %v110_v25 = vmul.f32 0.5, %v108_v10 }
  0xe3   :  { %v115_v14 = vmul.f32 %v113_v12, %v107_v6  ;;  %v114_v15 = vmul.f32 %v112_v13, %v108_v10 }
  0xe5   :  { %v117_v16 = vadd.f32 %v115_v14, %v107_v6  ;;  %v116_v17 = vmul.f32 %v114_v15, %v108_v10 }
  0xe7   :  { %v119_v18 = vmul.f32 0.7978846, %v117_v16  ;;  %v118_v19 = vadd.f32 %v116_v17, %v108_v10 }
  0xe9   :  { %171 = vtanh.f32 %v119_v18  ;;  %v120_v20 = vmul.f32 0.7978846, %v118_v19 }
  0xeb   :  { %173 = vtanh.f32 %v120_v20 }
  0xf3   :  { %v172_v21 = vpop.eup %171 }
  0xf4   :  { %v123_v22 = vadd.f32 1.0, %v172_v21 }
  0xf5   :  { %v174_v23 = vpop.eup %173 }
  0xf6   :  { %v124_v26 = vadd.f32 1.0, %v174_v23  ;;  %v125_v27 = vmul.f32 %v123_v22, %v109_v24 }
  0xf8   :  { %v126_v28 = vmul.f32 %v124_v26, %v110_v25 }
  0xfa   :  { %v153_v29 = vpack.c.bf16 %v126_v28, %v125_v27 }
  0xfc   :  { %154 = vst [vmem:[%s215_s3] sm:$0xff] %v153_v29  }

// kernel: bertlm_forward.18
= control target key start
LH: loop header
LB: loop body
LE: loop exit
PB: predicated region body
PF: predicated region fallthrough
CT: control target
= control target key end

     0   :  { %vm30_vm0 = vcmask 261120   ;;  %v315_v0 = vmov 0.0   ;;  %vm316_vm1 = vmmov 0   ;;  %vm181_vm2 = vcmask 257024   ;;  %s420_s1 = inlined_call_operand.vmem [shape: bf16[128,32], index: 1, kind: input, shape index: {}]   ;;  %s421_s0 = inlined_call_operand.vmem [shape: bf16[16,128], index: 0, kind: input, shape index: {}]   ;;  %s422_s3 = inlined_call_operand.vmem [shape: bf16[16,32], index: 3, kind: input, shape index: {}]   ;;  %s423_s2 = inlined_call_operand.vmem [shape: f32[1,32], index: 2, kind: input, shape index: {}]   ;;  %s424_s6 = inlined_call_operand.vmem [shape: bf16[16,32], index: 6, kind: output, shape index: {0}]   ;;  %s425_s4 = inlined_call_operand.vmem [shape: f32[1,32], index: 4, kind: input, shape index: {}]   ;;  %s426_s5 = inlined_call_operand.vmem [shape: f32[1,32], index: 5, kind: input, shape index: {}]   ;;  %s427_s7 = inlined_call_operand.vmem [shape: bf16[16,32], index: 7, kind: output, shape index: {1}]  }
   0x1   :  { %280 = vmatprep.subr.bf16.mxu0 %v315_v0  ;;  %v302_v1 = vld [vmem:[%s420_s1] sm:$0xff]   ;;  %296 = vmatprep.mubr.msk.bf16.mxu0 %vm316_vm1, %v315_v0  ;;  %31 = vst.msk [vmem:[#allocation2] sm:$0xff] %vm30_vm0, %v315_v0  ;;  %32 = vst.msk [vmem:[#allocation2 + $0x8] sm:$0xff] %vm30_vm0, %v315_v0  ;;  %v303_v2 = vld [vmem:[%s420_s1 + $0x8] sm:$0xff]  }
   0x2   :  { %281 = vmatpush3.bf16.msra.mxu0 %v302_v1  ;;  %v304_v3 = vld [vmem:[%s420_s1 + $0x10] sm:$0xff]   ;;  %v305_v4 = vld [vmem:[%s420_s1 + $0x18] sm:$0xff]   ;;  %v306_v5 = vld [vmem:[%s420_s1 + $0x20] sm:$0xff]  }
   0x3   :  { %282 = vmatprep.subr.bf16.mxu0 %v315_v0  ;;  %v307_v6 = vld [vmem:[%s420_s1 + $0x28] sm:$0xff]   ;;  %v308_v7 = vld [vmem:[%s420_s1 + $0x30] sm:$0xff]   ;;  %v309_v8 = vld [vmem:[%s420_s1 + $0x38] sm:$0xff]  }
   0x4   :  { %v310_v9 = vld [vmem:[%s421_s0] sm:$0xff]  }
   0x5   :  { %v268_v18 = vld [vmem:[%s422_s3] sm:$0xff]  }
   0x6   :  { %283 = vmatpush3.bf16.msra.mxu0 %v303_v2  ;;  %v256_v19 = vld [vmem:[%s423_s2] ss:$0 sm:$0xff]  ;;  %v269_v20 = vunpack.c.l.bf16 %v268_v18  ;;  %v270_v23 = vunpack.c.h.bf16 %v268_v18 }
   0x7   :  { %284 = vmatprep.subr.bf16.mxu0 %v315_v0  ;;  %v259_v49 = vld [vmem:[%s425_s4] ss:$0 sm:$0xff] }
   0x8   :  { %v33_v10 = vld [vmem:[#allocation2] sm:$0xff]  ;;  %v34_v12 = vld [vmem:[#allocation2 + $0x8] sm:$0xff] }
   0x9   :  { %v260_v51 = vld [vmem:[%s426_s5] ss:$0 sm:$0xff] }
   0xa   :  { %285 = vmatpush3.bf16.msra.mxu0 %v304_v3 }
   0xb   :  { %286 = vmatprep.subr.bf16.mxu0 %v315_v0 }
   0xe   :  { %287 = vmatpush3.bf16.msra.mxu0 %v305_v4 }
   0xf   :  { %288 = vmatprep.subr.bf16.mxu0 %v315_v0 }
  0x12   :  { %289 = vmatpush3.bf16.msra.mxu0 %v306_v5 }
  0x13   :  { %290 = vmatprep.subr.bf16.mxu0 %v315_v0 }
  0x16   :  { %291 = vmatpush3.bf16.msra.mxu0 %v307_v6 }
  0x17   :  { %292 = vmatprep.subr.bf16.mxu0 %v315_v0 }
  0x1a   :  { %293 = vmatpush3.bf16.msra.mxu0 %v308_v7 }
  0x1b   :  { %294 = vmatprep.subr.bf16.mxu0 %v315_v0 }
  0x1e   :  { %295 = vmatpush3.bf16.msra.mxu0 %v309_v8 }
  0x21   :  { %297 = vmatmul.mubr.bf16.vlgmr.msra.gmra.mrb[0].mxu0 %v310_v9 }
  0xf4   :  { %v141_v11 = vpop.f32.mrb[0].mxu0 }
  0xf5   :  { %v148_v13 = vadd.f32 %v141_v11, %v33_v10  ;;  %v298_v14 = vpop.f32.mrb[1].mxu0 }
  0xf6   :  { %v144_v15 = vpop.f32.mrb[2].mxu0 }
  0xf7   :  { %151 = vst.msk [vmem:[#allocation2] sm:$0xff] %vm30_vm0, %v148_v13  ;;  %v149_v16 = vadd.f32 %v144_v15, %v34_v12  ;;  %v299_v17 = vpop.f32.mrb[3].mxu0 }
  0xf9   :  { %152 = vst.msk [vmem:[#allocation2 + $0x8] sm:$0xff] %vm30_vm0, %v149_v16 }
  0xfe   :  { %v156_v21 = vld [vmem:[#allocation2] sm:$0xff] }
  0xff   :  { %v165_v22 = vadd.f32 %v256_v19, %v156_v21 }
 0x100   :  { %v157_v24 = vld [vmem:[#allocation2 + $0x8] sm:$0xff] }
 0x101   :  { %v171_v25 = vadd.f32 %v269_v20, %v165_v22  ;;  %v166_v26 = vadd.f32 %v256_v19, %v157_v24 }
 0x103   :  { %v184_v27 = vsel %vm30_vm0, %v171_v25, 0.0  ;;  %v263_v28 = vpack.c.bf16 %v171_v25, %v171_v25  ;;  %v172_v29 = vadd.f32 %v270_v23, %v166_v26 }
 0x104   :  { %185 = vadd.xlane.f32.xlu0 %v184_v27 }
 0x105   :  { %182 = vst.msk [vmem:[%s424_s6] sm:$0xf] %vm181_vm2, %v263_v28  ;;  %v264_v30 = vpack.c.bf16 %v172_v29, %v172_v29  ;;  %v187_v31 = vsel %vm30_vm0, %v172_v29, 0.0 }
 0x107   :  { %183 = vst.msk [vmem:[%s424_s6 + $0x4] sm:$0xf] %vm181_vm2, %v264_v30 }
 0x108   :  { %188 = vadd.xlane.f32.xlu0 %v187_v31 }
 0x191   :  { %v186_v32 = vpop.xlane.xlu0 %185 }
 0x192   :  { %v191_v33 = vmul.f32 0.03125, %v186_v32 }
 0x194   :  { %v193_v34 = vsub.f32 %v171_v25, %v191_v33 }
 0x195   :  { %v189_v35 = vpop.xlane.xlu0 %188 }
 0x196   :  { %v192_v36 = vmul.f32 0.03125, %v189_v35  ;;  %v195_v37 = vmul.f32 %v193_v34, %v193_v34 }
 0x198   :  { %v194_v38 = vsub.f32 %v172_v29, %v192_v36  ;;  %v197_v39 = vsel %vm30_vm0, %v195_v37, 0.0 }
 0x199   :  { %198 = vadd.xlane.f32.xlu1 %v197_v39 }
 0x19a   :  { %v196_v40 = vmul.f32 %v194_v38, %v194_v38 }
 0x19c   :  { %v200_v41 = vsel %vm30_vm0, %v196_v40, 0.0 }
 0x19d   :  { %201 = vadd.xlane.f32.xlu1 %v200_v41 }
 0x226   :  { %v199_v42 = vpop.xlane.xlu1 %198 }
 0x227   :  { %v203_v43 = vmul.f32 0.03125, %v199_v42 }
 0x229   :  { %v205_v44 = vadd.f32 1e-06, %v203_v43 }
 0x22a   :  { %v202_v45 = vpop.xlane.xlu1 %201 }
 0x22b   :  { %311 = vrsqrt.f32 %v205_v44  ;;  %v204_v46 = vmul.f32 0.03125, %v202_v45 }
 0x22d   :  { %v206_v47 = vadd.f32 1e-06, %v204_v46 }
 0x22f   :  { %313 = vrsqrt.f32 %v206_v47 }
 0x235   :  { %v312_v48 = vpop.eup %311 }
 0x236   :  { %v209_v50 = vmul.f32 %v312_v48, %v193_v34 }
 0x238   :  { %v218_v52 = vmul.f32 %v259_v49, %v209_v50 }
 0x239   :  { %v314_v53 = vpop.eup %313 }
 0x23a   :  { %v227_v54 = vadd.f32 %v260_v51, %v218_v52  ;;  %v210_v55 = vmul.f32 %v314_v53, %v194_v38 }
 0x23c   :  { %v265_v56 = vpack.c.bf16 %v227_v54, %v227_v54  ;;  %v219_v57 = vmul.f32 %v259_v49, %v210_v55 }
 0x23e   :  { %237 = vst.msk [vmem:[%s427_s7] sm:$0xf] %vm181_vm2, %v265_v56  ;;  %v228_v58 = vadd.f32 %v260_v51, %v219_v57 }
 0x240   :  { %v266_v59 = vpack.c.bf16 %v228_v58, %v228_v58 }
 0x242   :  { %238 = vst.msk [vmem:[%s427_s7 + $0x4] sm:$0xf] %vm181_vm2, %v266_v59 }

// kernel: bertlm_forward.25
= control target key start
LH: loop header
LB: loop body
LE: loop exit
PB: predicated region body
PF: predicated region fallthrough
CT: control target
= control target key end

     0   :  { %vm11_vm0 = vcmask 523264   ;;  %s126_s0 = inlined_call_operand.vmem [shape: f32[16,64], index: 0, kind: input, shape index: {}]   ;;  %s127_s1 = inlined_call_operand.hbm [shape: f32[16,64], index: 1, kind: output, shape index: {}]  }
   0x1   :  { %v9_v0 = vld [vmem:[%s126_s0] sm:$0xff]  ;;  %v10_v1 = vld [vmem:[%s126_s0 + $0x8] sm:$0xff] }
   0x2   :  { %6 = vsyncpa [#allocation3], 0  ;;  %v12_v2 = vsel %vm11_vm0, %v9_v0, -inf  ;;  %v15_v3 = vsel %vm11_vm0, %v10_v1, -inf  ;;  %s89_s0 = smov [#allocation2]  }
   0x3   :  { %13 = vmax.xlane.f32.xlu0 %v12_v2  ;;  %s43_s10 = sshll.u32 %s89_s0, 4  ;;  %s44_s10 = int_to_ptr.vmem [resolvable:$true] %s43_s10 }
   0x4   :  { %s65_s11 = scalar_lea.vmem %s44_s10, 256  ;;  %p70_p1 = scmp.lt.s32.totalorder %s44_s10, %s44_s10 }
   0x5   :  { %p66_p0 = scmp.ne.s32.totalorder %s44_s10, %s65_s11  ;;  %p71_p2 = scmp.lt.s32.totalorder %s65_s11, %s65_s11 }
   0x7   :  { %16 = vmax.xlane.f32.xlu0 %v15_v3  ;;  %p72_p3 = por %p71_p2, %p70_p1 }
   0x9   :  { %p73_p4 = pnand %p72_p3, %p66_p0 }
  0x90   :  { %v14_v4 = vpop.xlane.xlu0 %13 }
  0x91   :  { %v18_v5 = vsub.f32 %v9_v0, %v14_v4 }
  0x93   :  { %v20_v6 = vmul.f32 1.442695, %v18_v5 }
  0x94   :  { %v17_v7 = vpop.xlane.xlu0 %16 }
  0x95   :  { %57 = vpow2.f32 %v20_v6  ;;  %v19_v8 = vsub.f32 %v10_v1, %v17_v7 }
  0x97   :  { %v22_v9 = vmul.f32 1.442695, %v19_v8 }
  0x99   :  { %59 = vpow2.f32 %v22_v9 }
  0x9f   :  { %v58_v10 = vpop.eup %57 }
  0xa0   :  { %v24_v11 = vsel %vm11_vm0, %v58_v10, 0.0 }
  0xa1   :  { %25 = vadd.xlane.f32.xlu1 %v24_v11 }
  0xa3   :  { %v60_v12 = vpop.eup %59 }
  0xa4   :  { %v27_v13 = vsel %vm11_vm0, %v60_v12, 0.0 }
  0xa5   :  { %28 = vadd.xlane.f32.xlu1 %v27_v13 }
 0x12e   :  { %v26_v14 = vpop.xlane.xlu1 %25 }
 0x12f   :  { %61 = vlog2.f32 %v26_v14 }
 0x132   :  { %v29_v15 = vpop.xlane.xlu1 %28 }
 0x133   :  { %63 = vlog2.f32 %v29_v15 }
 0x139   :  { %v62_v16 = vpop.eup %61 }
 0x13a   :  { %v31_v17 = vmul.f32 0.6931472, %v62_v16 }
 0x13c   :  { %v34_v18 = vsub.f32 %v18_v5, %v31_v17 }
 0x13d   :  { %v64_v19 = vpop.eup %63 }
 0x13e   :  { %36 = vst.msk [vmem:[#allocation2] sm:$0xff] %vm11_vm0, %v34_v18  ;;  %v33_v20 = vmul.f32 0.6931472, %v64_v19 }
 0x140   :  { %v35_v21 = vsub.f32 %v19_v8, %v33_v20 }
 0x142   :  { %37 = vst.msk [vmem:[#allocation2 + $0x8] sm:$0xff] %vm11_vm0, %v35_v21 }
 0x143   :  { %76 = shalt.err (!%p73_p4)
}
 0x144   :  { %s77_s14 = scalar_lea.hbm %s127_s1, 256 }
 0x145   :  { %p78_p5 = scmp.ne.s32.totalorder %s127_s1, %s77_s14  ;;  %p81_p6 = scmp.lt.u32.totalorder %s77_s14, %s127_s1 }
 0x147   :  { %p83_p7 = pnand %p81_p6, %p78_p5 }
 0x149   :  { %86 = shalt.err (!%p83_p7)
}
 0x14a   :  { %s90_s19 = smov 128   ;;  %s91_s20 = smov 8  }
 0x14b   :  { %49 = dma.vmem_to_hbm [thread:$0]  %s44_s10, 256, %s127_s1, [#allocation3], %s90_s19, %s90_s19, %s91_s20  }
 0x14c   :  { %87 = dma.done.wait [#allocation3], 256  }
 0x14d   :  { %88 = vsyncadd [#allocation3], 4294967040 }
 0x14e   :  { %53 = vsyncpa [#allocation3], 1 }

// kernel: bertlm_forward.24
= control target key start
LH: loop header
LB: loop body
LE: loop exit
PB: predicated region body
PF: predicated region fallthrough
CT: control target
= control target key end

     0   :  { %vm19_vm0 = vcmask 523264   ;;  %v138_v0 = vmov 0.0   ;;  %vm139_vm1 = vmmov 0   ;;  %vm47_vm2 = vcmask 261120   ;;  %s184_s1 = inlined_call_operand.vmem [shape: bf16[32,64], index: 1, kind: input, shape index: {}]   ;;  %s185_s0 = inlined_call_operand.vmem [shape: bf16[16,32], index: 0, kind: input, shape index: {}]   ;;  %s186_s2 = inlined_call_operand.vmem [shape: f32[1,64], index: 2, kind: input, shape index: {}]   ;;  %s187_s3 = inlined_call_operand.vmem [shape: f32[16,64], index: 3, kind: output, shape index: {}]  }
   0x1   :  { %125 = vmatprep.subr.bf16.mxu0 %v138_v0  ;;  %v135_v1 = vld [vmem:[%s184_s1] sm:$0xff]   ;;  %129 = vmatprep.mubr.msk.bf16.mxu0 %vm139_vm1, %v138_v0  ;;  %20 = vst.msk [vmem:[#allocation2] sm:$0xff] %vm19_vm0, %v138_v0  ;;  %21 = vst.msk [vmem:[#allocation2 + $0x8] sm:$0xff] %vm19_vm0, %v138_v0  ;;  %v136_v2 = vld [vmem:[%s184_s1 + $0x8] sm:$0xff]  }
   0x2   :  { %126 = vmatpush3.bf16.msra.mxu0 %v135_v1  ;;  %v137_v3 = vld [vmem:[%s185_s0] sm:$0xff]  }
   0x3   :  { %127 = vmatprep.subr.bf16.mxu0 %v138_v0  ;;  %v121_v12 = vld [vmem:[%s186_s2] ss:$0 sm:$0xff] }
   0x6   :  { %128 = vmatpush3.bf16.msra.mxu0 %v136_v2 }
   0x8   :  { %v22_v4 = vld [vmem:[#allocation2] sm:$0xff]  ;;  %v23_v6 = vld [vmem:[#allocation2 + $0x8] sm:$0xff] }
   0x9   :  { %130 = vmatmul.mubr.msk.bf16.vlgmr.msra.gmra.mrb[0].mxu0 %vm47_vm2, %v137_v3 }
  0xdc   :  { %v85_v5 = vpop.f32.mrb[0].mxu0 }
  0xdd   :  { %v92_v7 = vadd.f32 %v85_v5, %v22_v4  ;;  %v131_v8 = vpop.f32.mrb[1].mxu0 }
  0xde   :  { %v88_v9 = vpop.f32.mrb[2].mxu0 }
  0xdf   :  { %95 = vst.msk [vmem:[#allocation2] sm:$0xff] %vm19_vm0, %v92_v7  ;;  %v93_v10 = vadd.f32 %v88_v9, %v23_v6  ;;  %v132_v11 = vpop.f32.mrb[3].mxu0 }
  0xe1   :  { %96 = vst.msk [vmem:[#allocation2 + $0x8] sm:$0xff] %vm19_vm0, %v93_v10 }
  0xe6   :  { %v100_v13 = vld [vmem:[#allocation2] sm:$0xff] }
  0xe7   :  { %v109_v14 = vadd.f32 %v121_v12, %v100_v13 }
  0xe8   :  { %v101_v15 = vld [vmem:[#allocation2 + $0x8] sm:$0xff] }
  0xe9   :  { %111 = vst.msk [vmem:[%s187_s3] sm:$0xff] %vm19_vm0, %v109_v14  ;;  %v110_v16 = vadd.f32 %v121_v12, %v101_v15 }
  0xeb   :  { %112 = vst.msk [vmem:[%s187_s3 + $0x8] sm:$0xff] %vm19_vm0, %v110_v16 }

</bundles_post_ra>
